<compile_context>
chip_gen: v7x
topology: tpu7x:2x2x1
jax: 0.10.0
libtpu: 0.0.40
codegen_flags: <defaults>
</compile_context>

<pallas_src>
import jax
import jax.numpy as jnp
from jax.experimental import pallas as pl
from jax.experimental.pallas import tpu as pltpu


def chebnet_kernel(s_ref, x_ref, w10_ref, w11_ref, b1_ref,
                   w20_ref, w21_ref, b2_ref, out_ref):
    s = s_ref[...]                         # (G, N, N)  bf16 scaled Laplacian
    x = x_ref[...]                         # (G, N, F)  bf16 node features
    g, n, f = x.shape

    # ---- ChebConv layer 1 (K=2): two accumulated dots, M = G*N rows ----
    sx = jnp.einsum("gij,gjf->gif", s, x,
                    preferred_element_type=jnp.float32)               # S @ x
    x2 = x.reshape(g * n, f)
    sx2 = sx.astype(jnp.bfloat16).reshape(g * n, f)
    h = (jnp.dot(x2, w10_ref[...], preferred_element_type=jnp.float32)
         + jnp.dot(sx2, w11_ref[...], preferred_element_type=jnp.float32)
         + b1_ref[...])
    h = jnp.maximum(h, 0.0)                                           # ReLU
    # TODO(synk): dropout is identity here (module evaluated with training=False).

    # ---- ChebConv layer 2 (K=2) ----
    h16 = h.astype(jnp.bfloat16)                                      # (G*N, H)
    h16g = h16.reshape(g, n, -1)
    sh = jnp.einsum("gij,gjh->gih", s, h16g,
                    preferred_element_type=jnp.float32)               # S @ h
    sh2 = sh.astype(jnp.bfloat16).reshape(g * n, -1)
    # Pad class lanes of b2 are -1e30 (set in the wrapper), so pad logits are
    # huge-negative straight out of the bias add -> no masking needed below.
    y = (jnp.dot(h16, w20_ref[...], preferred_element_type=jnp.float32)
         + jnp.dot(sh2, w21_ref[...], preferred_element_type=jnp.float32)
         + b2_ref[...])                                               # (G*N, CP)

    # ---- log_softmax (pad lanes exp-underflow to 0; sliced off by consumer) ----
    m = jnp.max(y, axis=-1, keepdims=True)
    e = jnp.exp(y - m)
    lse = jnp.log(jnp.sum(e, axis=-1, keepdims=True)) + m
    cp = y.shape[-1]
    out_ref[...] = (y - lse).reshape(g, n, cp)


def _pick_graphs_per_step(batch, n_nodes, target_rows=256):
    """Largest divisor G of batch s.t. the grid keeps >=2 steps, preferring
    G*N >= target_rows (fills the v6e/v7x 256-wide MXU M dimension)."""
    g = 1
    for cand in range(1, batch + 1):
        if batch % cand != 0:
            continue
        if cand > 1 and batch // cand < 2:
            # keep >=2 grid steps so v7x's second TensorCore gets work
            continue
        g = cand
        if cand * n_nodes >= target_rows:
            break
    return g


def chebnet_forward(s, x, w10, w11, b1, w20, w21, b2, *, graphs_per_step=None):
    """Batched ChebNet forward.

    s: [B, N, N] scaled Laplacian, x: [B, N, F] node features (float32).
    Returns the lane-dense padded [B, N, CP] log-probabilities (float32);
    columns [C:CP] are pad lanes (~-1e30) — slice [:, :, :C] lazily in the
    consumer (keeping the slice out of this function avoids an extra HBM pass).
    """
    B, N, _ = s.shape
    F_in = x.shape[-1]
    H = w10.shape[1]
    C = w20.shape[1]
    CP = ((C + 127) // 128) * 128          # lane-dense padded class dim (>=128)

    G = graphs_per_step or _pick_graphs_per_step(B, N)
    assert B % G == 0, "batch must be divisible by graphs_per_step"

    w10b = w10.astype(jnp.bfloat16)                                  # (F, H)
    w11b = w11.astype(jnp.bfloat16)                                  # (F, H)
    w20p = jnp.pad(w20, ((0, 0), (0, CP - C))).astype(jnp.bfloat16)  # (H, CP)
    w21p = jnp.pad(w21, ((0, 0), (0, CP - C))).astype(jnp.bfloat16)  # (H, CP)
    # Pad bias lanes with a large negative -> pad logits exp-underflow to zero,
    # so the kernel needs no masking in its log_softmax epilogue.
    b2p = jnp.pad(b2, ((0, 0), (0, CP - C)), constant_values=-1e30)  # (1, CP)

    s16 = s.astype(jnp.bfloat16)
    x16 = x.astype(jnp.bfloat16)

    # VMEM budget derived from actual block sizes (double-buffered pipelined
    # blocks + resident weights), clamped below v7x's 64 MiB physical VMEM
    # (v5e/v6e have 128 MiB, so this is also safe there).
    blk_bytes = 2 * (G * N * N * 2 + G * N * F_in * 2 + G * N * CP * 4)
    res_bytes = 2 * ((2 * F_in * H + 2 * H * CP) * 2 + (H + CP) * 4)
    vmem_limit = int(min(max(2 * (blk_bytes + res_bytes), 32 << 20), 48 << 20))

    # NOTE: resident weight/bias specs could use pipeline_mode=pl.Buffered(1)
    # to reclaim their second buffer, but at these sizes VMEM is nowhere near
    # the limit, so we leave the default.
    out = pl.pallas_call(
        chebnet_kernel,
        out_shape=jax.ShapeDtypeStruct((B, N, CP), jnp.float32),
        grid=(B // G,),
        in_specs=[
            pl.BlockSpec((G, N, N), lambda b: (b, 0, 0)),        # S (per step)
            pl.BlockSpec((G, N, F_in), lambda b: (b, 0, 0)),     # X (per step)
            pl.BlockSpec((F_in, H), lambda b: (0, 0)),           # W1_0 (resident)
            pl.BlockSpec((F_in, H), lambda b: (0, 0)),           # W1_1 (resident)
            pl.BlockSpec((1, H), lambda b: (0, 0)),              # b1   (resident)
            pl.BlockSpec((H, CP), lambda b: (0, 0)),             # W2_0 (resident)
            pl.BlockSpec((H, CP), lambda b: (0, 0)),             # W2_1 (resident)
            pl.BlockSpec((1, CP), lambda b: (0, 0)),             # b2   (resident)
        ],
        out_specs=pl.BlockSpec((G, N, CP), lambda b: (b, 0, 0)),
        compiler_params=pltpu.CompilerParams(
            dimension_semantics=("parallel",),
            vmem_limit_bytes=vmem_limit,
        ),
    )(s16, x16, w10b, w11b, b1, w20p, w21p, b2p)
    return out


def build_scaled_laplacian(adj):
    """S = 2*L_sym/lambda_max - I with lambda_max=2  ==>  S = -D^{-1/2} A D^{-1/2}."""
    deg = jnp.sum(adj, axis=-1)
    dinv = jnp.where(deg > 0, 1.0 / jnp.sqrt(deg), 0.0)
    return -(dinv[..., :, None] * adj * dinv[..., None, :])


def reference_forward_f32(s, x, w10, w11, b1, w20, w21, b2):
    h = jnp.maximum(x @ w10 + (s @ x) @ w11 + b1, 0.0)
    y = h @ w20 + (s @ h) @ w21 + b2
    return jax.nn.log_softmax(y, axis=-1)


def reference_forward_bf16(s, x, w10, w11, b1, w20, w21, b2):
    """Pure-JAX reference mirroring the kernel's bf16/f32-accum arithmetic."""
    s16 = s.astype(jnp.bfloat16)
    x16 = x.astype(jnp.bfloat16)
    w10b, w11b = w10.astype(jnp.bfloat16), w11.astype(jnp.bfloat16)
    w20b, w21b = w20.astype(jnp.bfloat16), w21.astype(jnp.bfloat16)
    sx = jnp.einsum("bij,bjf->bif", s16, x16, preferred_element_type=jnp.float32)
    h = jnp.maximum(
        jnp.einsum("bnf,fh->bnh", x16, w10b, preferred_element_type=jnp.float32)
        + jnp.einsum("bnf,fh->bnh", sx.astype(jnp.bfloat16), w11b,
                     preferred_element_type=jnp.float32)
        + b1, 0.0)
    h16 = h.astype(jnp.bfloat16)
    sh = jnp.einsum("bij,bjh->bih", s16, h16, preferred_element_type=jnp.float32)
    y = (jnp.einsum("bnh,hc->bnc", h16, w20b, preferred_element_type=jnp.float32)
         + jnp.einsum("bnh,hc->bnc", sh.astype(jnp.bfloat16), w21b,
                      preferred_element_type=jnp.float32)
         + b2)
    return jax.nn.log_softmax(y, axis=-1)


if __name__ == "__main__":
    key = jax.random.PRNGKey(0)
    B, N, F_in, H, C = 8, 64, 16, 32, 8   # graphs, nodes, num_features, hidden, classes

    keys = jax.random.split(key, 2 + B)
    kx, kw = keys[0], keys[1]
    graph_keys = keys[2:]

    # Deterministic random undirected graphs (no self loops) -> dense adjacency.
    adjs = []
    for kA in graph_keys:
        a = (jax.random.uniform(kA, (N, N)) < 0.1).astype(jnp.float32)
        adjs.append(jnp.clip(a + a.T, 0.0, 1.0) * (1.0 - jnp.eye(N, dtype=jnp.float32)))
    adj = jnp.stack(adjs)                 # [B, N, N]
    S = build_scaled_laplacian(adj)       # [B, N, N]

    x = jax.random.normal(kx, (B, N, F_in), dtype=jnp.float32)

    # Deterministic glorot-style weight init (ChebConv K=2 -> 2 weight mats per layer).
    def glorot(k, shape):
        fan_in, fan_out = shape
        lim = jnp.sqrt(6.0 / (fan_in + fan_out))
        return jax.random.uniform(k, shape, jnp.float32, -lim, lim)

    k1, k2, k3, k4 = jax.random.split(kw, 4)
    w10 = glorot(k1, (F_in, H))
    w11 = glorot(k2, (F_in, H))
    b1 = jnp.zeros((1, H), dtype=jnp.float32)
    w20 = glorot(k3, (H, C))
    w21 = glorot(k4, (H, C))
    b2 = jnp.zeros((1, C), dtype=jnp.float32)

    out_padded = chebnet_forward(S, x, w10, w11, b1, w20, w21, b2)
    out_padded = jax.block_until_ready(out_padded)
    assert out_padded.shape[0] == B and out_padded.shape[1] == N
    out = out_padded[:, :, :C]            # drop pad lanes (test-side only)
    assert out.shape == (B, N, C)

    # Tight check vs. a bf16-matched pure-JAX reference (same arithmetic).
    ref16 = reference_forward_bf16(S, x, w10, w11, b1, w20, w21, b2)
    assert jnp.allclose(out, ref16, atol=1e-2, rtol=1e-2)

    # Loose check vs. the full-f32 reference (bf16 matmul rounding tolerance).
    ref32 = reference_forward_f32(S, x, w10, w11, b1, w20, w21, b2)
    assert jnp.allclose(out, ref32, atol=1e-1, rtol=1e-1)

    print("KERNEL_OK")
</pallas_src>

<mosaic_0001>
module attributes {stable_mosaic.version = 11 : i64} {
  func.func @chebnet_kernel(%arg0: i32, %arg1: memref<4x64x64xbf16, #tpu.memory_space<vmem>>, %arg2: memref<4x64x16xbf16, #tpu.memory_space<vmem>>, %arg3: memref<16x32xbf16, #tpu.memory_space<vmem>>, %arg4: memref<16x32xbf16, #tpu.memory_space<vmem>>, %arg5: memref<1x32xf32, #tpu.memory_space<vmem>>, %arg6: memref<32x128xbf16, #tpu.memory_space<vmem>>, %arg7: memref<32x128xbf16, #tpu.memory_space<vmem>>, %arg8: memref<1x128xf32, #tpu.memory_space<vmem>>, %arg9: memref<4x64x128xf32, #tpu.memory_space<vmem>>) attributes {dimension_semantics = [#tpu.dimension_semantics<parallel>], iteration_bounds = array<i64: 2>, scalar_prefetch = 0 : i64, scratch_operands = 0 : i64, tpu.core_type = #tpu.core_type<tc>, window_params = [{transform_indices = @transform_0, window_bounds = array<i64: 4, 64, 64>}, {transform_indices = @transform_1, window_bounds = array<i64: 4, 64, 16>}, {pipeline_mode = #tpu.pipeline_mode<synchronous>, transform_indices = @transform_2, window_bounds = array<i64: 16, 32>}, {pipeline_mode = #tpu.pipeline_mode<synchronous>, transform_indices = @transform_3, window_bounds = array<i64: 16, 32>}, {pipeline_mode = #tpu.pipeline_mode<synchronous>, transform_indices = @transform_4, window_bounds = array<i64: 1, 32>}, {pipeline_mode = #tpu.pipeline_mode<synchronous>, transform_indices = @transform_5, window_bounds = array<i64: 32, 128>}, {pipeline_mode = #tpu.pipeline_mode<synchronous>, transform_indices = @transform_6, window_bounds = array<i64: 32, 128>}, {pipeline_mode = #tpu.pipeline_mode<synchronous>, transform_indices = @transform_7, window_bounds = array<i64: 1, 128>}, {transform_indices = @transform_8, window_bounds = array<i64: 4, 64, 128>}]} {
    %c0 = arith.constant 0 : index
    %c0_0 = arith.constant 0 : index
    %c0_1 = arith.constant 0 : index
    %0 = vector.load %arg1[%c0, %c0_0, %c0_1] : memref<4x64x64xbf16, #tpu.memory_space<vmem>>, vector<4x64x64xbf16>
    %c0_2 = arith.constant 0 : index
    %c0_3 = arith.constant 0 : index
    %c0_4 = arith.constant 0 : index
    %1 = vector.load %arg2[%c0_2, %c0_3, %c0_4] : memref<4x64x16xbf16, #tpu.memory_space<vmem>>, vector<4x64x16xbf16>
    "tpu.trace_start"() <{level = 10 : i32, message = "gij,gjf->gif"}> : () -> ()
    %cst = arith.constant dense<0.000000e+00> : vector<4x64x16xf32>
    %2 = tpu.matmul %0, %1, %cst {dimension_numbers = #tpu.dot_dimension_numbers<[2], [1], [1], [2], [0, 0, 0, 1, 1, 2], [0], [0]>} : vector<4x64x64xbf16>, vector<4x64x16xbf16>, vector<4x64x16xf32> -> vector<4x64x16xf32>
    "tpu.trace_stop"() : () -> ()
    %3 = vector.shape_cast %1 : vector<4x64x16xbf16> to vector<256x16xbf16>
    %4 = arith.truncf %2 : vector<4x64x16xf32> to vector<4x64x16xbf16>
    %5 = vector.shape_cast %4 : vector<4x64x16xbf16> to vector<256x16xbf16>
    %c0_5 = arith.constant 0 : index
    %c0_6 = arith.constant 0 : index
    %6 = vector.load %arg3[%c0_5, %c0_6] : memref<16x32xbf16, #tpu.memory_space<vmem>>, vector<16x32xbf16>
    %cst_7 = arith.constant dense<0.000000e+00> : vector<256x32xf32>
    %7 = tpu.matmul %3, %6, %cst_7 {dimension_numbers = #tpu.dot_dimension_numbers<[1], [0], [0], [1], [0, 0, 1, 1], [], []>} : vector<256x16xbf16>, vector<16x32xbf16>, vector<256x32xf32> -> vector<256x32xf32>
    %c0_8 = arith.constant 0 : index
    %c0_9 = arith.constant 0 : index
    %8 = vector.load %arg4[%c0_8, %c0_9] : memref<16x32xbf16, #tpu.memory_space<vmem>>, vector<16x32xbf16>
    %cst_10 = arith.constant dense<0.000000e+00> : vector<256x32xf32>
    %9 = tpu.matmul %5, %8, %cst_10 {dimension_numbers = #tpu.dot_dimension_numbers<[1], [0], [0], [1], [0, 0, 1, 1], [], []>} : vector<256x16xbf16>, vector<16x32xbf16>, vector<256x32xf32> -> vector<256x32xf32>
    %10 = arith.addf %7, %9 : vector<256x32xf32>
    %c0_11 = arith.constant 0 : index
    %c0_12 = arith.constant 0 : index
    %11 = vector.load %arg5[%c0_11, %c0_12] : memref<1x32xf32, #tpu.memory_space<vmem>>, vector<1x32xf32>
    %12 = vector.broadcast %11 : vector<1x32xf32> to vector<256x32xf32>
    %13 = arith.addf %10, %12 : vector<256x32xf32>
    %cst_13 = arith.constant 0.000000e+00 : f32
    %14 = vector.broadcast %cst_13 : f32 to vector<256x32xf32>
    %15 = arith.maximumf %13, %14 : vector<256x32xf32>
    %16 = arith.truncf %15 : vector<256x32xf32> to vector<256x32xbf16>
    %17 = vector.shape_cast %16 : vector<256x32xbf16> to vector<4x64x32xbf16>
    "tpu.trace_start"() <{level = 10 : i32, message = "gij,gjh->gih"}> : () -> ()
    %cst_14 = arith.constant dense<0.000000e+00> : vector<4x64x32xf32>
    %18 = tpu.matmul %0, %17, %cst_14 {dimension_numbers = #tpu.dot_dimension_numbers<[2], [1], [1], [2], [0, 0, 0, 1, 1, 2], [0], [0]>} : vector<4x64x64xbf16>, vector<4x64x32xbf16>, vector<4x64x32xf32> -> vector<4x64x32xf32>
    "tpu.trace_stop"() : () -> ()
    %19 = arith.truncf %18 : vector<4x64x32xf32> to vector<4x64x32xbf16>
    %20 = vector.shape_cast %19 : vector<4x64x32xbf16> to vector<256x32xbf16>
    %c0_15 = arith.constant 0 : index
    %c0_16 = arith.constant 0 : index
    %21 = vector.load %arg6[%c0_15, %c0_16] : memref<32x128xbf16, #tpu.memory_space<vmem>>, vector<32x128xbf16>
    %cst_17 = arith.constant dense<0.000000e+00> : vector<256x128xf32>
    %22 = tpu.matmul %16, %21, %cst_17 {dimension_numbers = #tpu.dot_dimension_numbers<[1], [0], [0], [1], [0, 0, 1, 1], [], []>} : vector<256x32xbf16>, vector<32x128xbf16>, vector<256x128xf32> -> vector<256x128xf32>
    %c0_18 = arith.constant 0 : index
    %c0_19 = arith.constant 0 : index
    %23 = vector.load %arg7[%c0_18, %c0_19] : memref<32x128xbf16, #tpu.memory_space<vmem>>, vector<32x128xbf16>
    %cst_20 = arith.constant dense<0.000000e+00> : vector<256x128xf32>
    %24 = tpu.matmul %20, %23, %cst_20 {dimension_numbers = #tpu.dot_dimension_numbers<[1], [0], [0], [1], [0, 0, 1, 1], [], []>} : vector<256x32xbf16>, vector<32x128xbf16>, vector<256x128xf32> -> vector<256x128xf32>
    %25 = arith.addf %22, %24 : vector<256x128xf32>
    %c0_21 = arith.constant 0 : index
    %c0_22 = arith.constant 0 : index
    %26 = vector.load %arg8[%c0_21, %c0_22] : memref<1x128xf32, #tpu.memory_space<vmem>>, vector<1x128xf32>
    %27 = vector.broadcast %26 : vector<1x128xf32> to vector<256x128xf32>
    %28 = arith.addf %25, %27 : vector<256x128xf32>
    %cst_23 = arith.constant dense<0xFF800000> : vector<256xf32>
    %29 = vector.multi_reduction <maximumf>, %28, %cst_23 [1] : vector<256x128xf32> to vector<256xf32>
    %30 = vector.shape_cast %29 : vector<256xf32> to vector<256x1xf32>
    %31 = vector.broadcast %30 : vector<256x1xf32> to vector<256x128xf32>
    %32 = arith.subf %28, %31 : vector<256x128xf32>
    %33 = math.exp %32 : vector<256x128xf32>
    %cst_24 = arith.constant dense<0.000000e+00> : vector<256xf32>
    %34 = vector.multi_reduction <add>, %33, %cst_24 [1] : vector<256x128xf32> to vector<256xf32>
    %35 = vector.shape_cast %34 : vector<256xf32> to vector<256x1xf32>
    %36 = math.log %35 : vector<256x1xf32>
    %37 = arith.addf %36, %30 : vector<256x1xf32>
    %38 = vector.broadcast %37 : vector<256x1xf32> to vector<256x128xf32>
    %39 = arith.subf %28, %38 : vector<256x128xf32>
    %40 = vector.shape_cast %39 : vector<256x128xf32> to vector<4x64x128xf32>
    %c0_25 = arith.constant 0 : index
    %c0_26 = arith.constant 0 : index
    %c0_27 = arith.constant 0 : index
    %41 = vector.load %arg9[%c0_25, %c0_26, %c0_27] : memref<4x64x128xf32, #tpu.memory_space<vmem>>, vector<4x64x128xf32>
    tpu.vector_store %arg9[%c0_25, %c0_26, %c0_27], %40 {strides = array<i32>} : memref<4x64x128xf32, #tpu.memory_space<vmem>>, vector<4x64x128xf32>,
    return
  }
  func.func @transform_0(%arg0: i32) -> (i32, i32, i32) {
    %c0_i32 = arith.constant 0 : i32
    %c0_i32_0 = arith.constant 0 : i32
    %c0_i32_1 = arith.constant 0 : i32
    return %arg0, %c0_i32, %c0_i32_0 : i32, i32, i32
  }
  func.func @transform_1(%arg0: i32) -> (i32, i32, i32) {
    %c0_i32 = arith.constant 0 : i32
    %c0_i32_0 = arith.constant 0 : i32
    %c0_i32_1 = arith.constant 0 : i32
    return %arg0, %c0_i32, %c0_i32_0 : i32, i32, i32
  }
  func.func @transform_2(%arg0: i32) -> (i32, i32) {
    %c0_i32 = arith.constant 0 : i32
    %c0_i32_0 = arith.constant 0 : i32
    %c0_i32_1 = arith.constant 0 : i32
    return %c0_i32, %c0_i32_0 : i32, i32
  }
  func.func @transform_3(%arg0: i32) -> (i32, i32) {
    %c0_i32 = arith.constant 0 : i32
    %c0_i32_0 = arith.constant 0 : i32
    %c0_i32_1 = arith.constant 0 : i32
    return %c0_i32, %c0_i32_0 : i32, i32
  }
  func.func @transform_4(%arg0: i32) -> (i32, i32) {
    %c0_i32 = arith.constant 0 : i32
    %c0_i32_0 = arith.constant 0 : i32
    %c0_i32_1 = arith.constant 0 : i32
    return %c0_i32, %c0_i32_0 : i32, i32
  }
  func.func @transform_5(%arg0: i32) -> (i32, i32) {
    %c0_i32 = arith.constant 0 : i32
    %c0_i32_0 = arith.constant 0 : i32
    %c0_i32_1 = arith.constant 0 : i32
    return %c0_i32, %c0_i32_0 : i32, i32
  }
  func.func @transform_6(%arg0: i32) -> (i32, i32) {
    %c0_i32 = arith.constant 0 : i32
    %c0_i32_0 = arith.constant 0 : i32
    %c0_i32_1 = arith.constant 0 : i32
    return %c0_i32, %c0_i32_0 : i32, i32
  }
  func.func @transform_7(%arg0: i32) -> (i32, i32) {
    %c0_i32 = arith.constant 0 : i32
    %c0_i32_0 = arith.constant 0 : i32
    %c0_i32_1 = arith.constant 0 : i32
    return %c0_i32, %c0_i32_0 : i32, i32
  }
  func.func @transform_8(%arg0: i32) -> (i32, i32, i32) {
    %c0_i32 = arith.constant 0 : i32
    %c0_i32_0 = arith.constant 0 : i32
    %c0_i32_1 = arith.constant 0 : i32
    return %arg0, %c0_i32, %c0_i32_0 : i32, i32, i32
  }
}

</mosaic_0001>

<bundles_post_ra>
// kernel: tpu_custom_call.1
= control target key start
LH: loop header
LB: loop body
LE: loop exit
PB: predicated region body
PF: predicated region fallthrough
CT: control target
= control target key end

     0   :  { %13 = vsyncpa [#allocation3], 0  ;;  %s4494_s0 = inlined_call_operand.vmem [shape: bf16[8,64,64], index: 0, kind: input, shape index: {}]   ;;  %s4495_s1 = inlined_call_operand.vmem [shape: bf16[8,64,16], index: 1, kind: input, shape index: {}]   ;;  %s4496_s2 = inlined_call_operand.vmem [shape: bf16[16,32], index: 2, kind: input, shape index: {}]   ;;  %s4497_s3 = inlined_call_operand.vmem [shape: bf16[16,32], index: 3, kind: input, shape index: {}]   ;;  %s4498_s4 = inlined_call_operand.vmem [shape: f32[1,32], index: 4, kind: input, shape index: {}]   ;;  %s4499_s5 = inlined_call_operand.vmem [shape: bf16[32,128], index: 5, kind: input, shape index: {}]   ;;  %s4500_s6 = inlined_call_operand.vmem [shape: bf16[32,128], index: 6, kind: input, shape index: {}]   ;;  %s4501_s7 = inlined_call_operand.vmem [shape: f32[1,128], index: 7, kind: input, shape index: {}]   ;;  %s4502_s8 = inlined_call_operand.hbm [shape: f32[8,64,128], index: 8, kind: output, shape index: {}]  }
   0x1   :  { %15 = vsyncpa [#allocation3 + $0x1], 0  ;;  %s3608_s27 = smov 0   ;;  %s3610_s28 = smov 0  }
   0x2   :  { %s3612_s29 = smov 0   ;;  %s3614_s30 = smov 0  }
   0x3 LB: > { %s3629_s9 = sadd.s32 4294967295, %s3558_s30   ;;  %s2662_s10 = sadd.s32 4294967294, %s3558_s30   ;;  %s3558_s30 = sphi %s3614_s30, %s4547_s30   ;;  %s3554_s29 = sphi %s3612_s29, %s4546_s29   ;;  %s3550_s28 = sphi %s3610_s28, %s4545_s28   ;;  %s3546_s27 = sphi %s3608_s27, %s4544_s27  }
   0x4   : > { %s3633_s11 = sadd.s32 1, %s3558_s30   ;;  %s206_s12 = sadd.s32 1, %s3554_s29 }
   0x5   : > { %s203_s13 = ssub.s32 %s3558_s30, %s3633_s11  ;;  %p216_p0 = scmp.ne.s32.totalorder %s3554_s29, %s3550_s28 }
   0x6   : > { %p204_p1 = scmp.eq.s32.totalorder %s203_s13, 0  ;;  %p217_p2 = scmp.eq.s32.totalorder %s3629_s9, 1 }
   0x7   : > { %p222_p3 = scmp.ne.s32.totalorder %s3550_s28, %s3546_s27  ;;  %p223_p4 = scmp.eq.s32.totalorder %s2662_s10, 1 }
   0x8   : > { %s3644_s14 = scalar_select %p204_p1, %s3554_s29, %s206_s12  }
   0x9   : > { %p3646_p5 = por %p217_p2, %p216_p0  ;;  %p3650_p6 = por %p223_p4, %p222_p3 }
   0xa   : > { %p2665_p7 = scmp.ge.s32.totalorder %s3558_s30, 1  ;;  %p279_p8 = scmp.lt.s32.totalorder %s3558_s30, 3 }
   0xc   : > { %p280_p9 = pnand %p2665_p7, %p279_p8 }
   0xe   : > { %283 = sbr.rel (%p280_p9) target bundleno = 1456 (0x5b0), region = 52 }
  0x15   : > { %s2667_s17 = sshll.u32 %s3629_s9, 2  ;;  %vm444_vm0 = vcmask 523264   ;;  %v3362_v25 = vld [vmem:[%s4497_s3] sm:$0xff]   ;;  %vm911_vm1 = vcmask 130048   ;;  %vm1719_vm2 = vcmask 261120   ;;  %s317_s12 = sand.u32 1, %s3550_s28  }
  0x16   : > { %p321_p10 = scmp.lt.s32.totalorder %s2667_s17, 7  ;;  %v3363_v33 = vld [vmem:[%s4496_s2] sm:$0xff]   ;;  %s2666_s13 = sshll.u32 %s317_s12, 8 }
  0x18   : > { %s4549_s17 = smov (!%p321_p10, %s2667_s17), 7 }
  0x19   : > { %s2815_s18 = sshll.u32 %s4549_s17, 5  ;;  %s4346_s17 = scalar_lea.vmem [#allocation2], %s2666_s13 }
  0x1a   : > { %s3660_s21 = scalar_lea.vmem %s4495_s1, %s2815_s18  ;;  %s3672_s24 = scalar_lea.vmem %s4494_s0, %s2815_s18 }
  0x1b   : > { %v3663_v0 = vld [vmem:[%s3660_s21] sm:$0xff]   ;;  %v3666_v1 = vld [vmem:[%s3660_s21 + $0x8] sm:$0xff]   ;;  %v3676_v2 = vld [vmem:[%s3660_s21 + $0x10] sm:$0xff]   ;;  %s2818_s18 = sshll.u32 %s3629_s9, 12  ;;  %s2588_s19 = sshll.u32 %s4346_s17, 4  ;;  %s4447_s19 = int_to_ptr.vmem [resolvable:$true] %s2588_s19 }
  0x1c   : > { %2953 = vmatprep.subr.bf16.mxu0 %v3663_v0  ;;  %v3680_v3 = vld [vmem:[%s3660_s21 + $0x20] sm:$0xff]   ;;  %v3686_v5 = vld [vmem:[%s3660_s21 + $0x18] sm:$0xff]   ;;  %v3692_v6 = vld [vmem:[%s3660_s21 + $0x28] sm:$0xff]   ;;  %s4445_s22 = scalar_lea.hbm %s4502_s8, %s2818_s18  ;;  %s4453_s9 = scalar_lea.sflag [#allocation3], %s317_s12 }
  0x1d   : > { %2954 = vmatpush3.bf16.msra.mxu0 %v3663_v0  ;;  %v3683_v4 = vld [vmem:[%s3672_s24] sm:$0xff]   ;;  %2969 = vmatprep.subr.bf16.mxu1 %v3680_v3  ;;  %v3698_v7 = vld [vmem:[%s3660_s21 + $0x30] sm:$0xff]   ;;  %v3704_v8 = vld [vmem:[%s3660_s21 + $0x38] sm:$0xff]   ;;  %s3496_s23 = scalar_lea.vmem %s4447_s19, 4096 }
  0x1e   : > { %2955 = vmatprep.subr.bf16.mxu0 %v3666_v1  ;;  %2970 = vmatpush3.bf16.msra.mxu1 %v3680_v3  ;;  %v3709_v9 = vld [vmem:[%s3672_s24 + $0x20] sm:$0xff]   ;;  %v3712_v10 = vld [vmem:[%s3672_s24 + $0x8] sm:$0xff]   ;;  %v3722_v12 = vld [vmem:[%s3672_s24 + $0x10] sm:$0xff]   ;;  %p3497_p11 = scmp.ne.s32.totalorder %s4447_s19, %s3496_s23 }
  0x1f   : > { %2961 = vmatprep.mubr.msk.bf16.mxu0 %vm444_vm0, %v3683_v4  ;;  %2971 = vmatprep.subr.bf16.mxu1 %v3692_v6  ;;  %v3717_v11 = vld [vmem:[%s3660_s21 + $0x40] sm:$0xff]   ;;  %v3727_v13 = vld [vmem:[%s3660_s21 + $0x48] sm:$0xff]   ;;  %v3738_v15 = vld [vmem:[%s3672_s24 + $0x30] sm:$0xff]  }
  0x20   : > { %2977 = vmatprep.mubr.msk.bf16.mxu1 %vm444_vm0, %v3709_v9  ;;  %v3732_v14 = vld [vmem:[%s3672_s24 + $0x28] sm:$0xff]   ;;  %v3741_v16 = vld [vmem:[%s3672_s24 + $0x18] sm:$0xff]   ;;  %v3745_v17 = vld [vmem:[%s3660_s21 + $0x50] sm:$0xff]   ;;  %p3498_p12 = pnand %p3497_p11, %p3646_p5 }
  0x21   : > { %2956 = vmatpush3.bf16.msra.mxu0 %v3666_v1  ;;  %v3749_v18 = vld [vmem:[%s3672_s24 + $0x40] sm:$0xff]   ;;  %v3759_v20 = vld [vmem:[%s3660_s21 + $0x68] sm:$0xff]   ;;  %v3763_v21 = vld [vmem:[%s3672_s24 + $0x38] sm:$0xff]  }
  0x22   : > { %2957 = vmatprep.subr.bf16.mxu0 %v3676_v2  ;;  %2972 = vmatpush3.bf16.msra.mxu1 %v3692_v6  ;;  %v3754_v19 = vld [vmem:[%s3660_s21 + $0x60] sm:$0xff]   ;;  %v3768_v22 = vld [vmem:[%s3660_s21 + $0x58] sm:$0xff]   ;;  %v3775_v23 = vld [vmem:[%s3660_s21 + $0x70] sm:$0xff]   ;;  %p3499_p13 = pneg %p3498_p12 }
  0x23   : > { %2973 = vmatprep.subr.bf16.mxu1 %v3698_v7  ;;  %v3781_v24 = vld [vmem:[%s3672_s24 + $0x60] sm:$0xff]   ;;  %v3792_v26 = vld [vmem:[%s3660_s21 + $0x78] sm:$0xff]   ;;  %v3795_v27 = vld [vmem:[%s3672_s24 + $0x48] sm:$0xff]  }
  0x24   : > { %v3801_v28 = vld [vmem:[%s3672_s24 + $0x50] sm:$0xff]   ;;  %v3810_v29 = vld [vmem:[%s3672_s24 + $0x68] sm:$0xff]   ;;  %v3817_v31 = vld [vmem:[%s3672_s24 + $0x58] sm:$0xff]  }
  0x25   : > { %2958 = vmatpush3.bf16.msra.mxu0 %v3676_v2  ;;  %v3814_v30 = vld [vmem:[%s3672_s24 + $0x70] sm:$0xff]   ;;  %v3826_v32 = vld [vmem:[%s3672_s24 + $0x78] sm:$0xff]   ;;  %s3560_s24 = smov [#allocation2]  }
  0x26   : > { %2959 = vmatprep.subr.bf16.mxu0 %v3686_v5  ;;  %2974 = vmatpush3.bf16.msra.mxu1 %v3698_v7  ;;  %s3500_s25 = sshll.u32 %s3560_s24, 4  ;;  %s3501_s25 = int_to_ptr.vmem [resolvable:$false] %s3500_s25 }
  0x27   : > { %2975 = vmatprep.subr.bf16.mxu1 %v3704_v8  ;;  %s3502_s26 = scalar_lea.vmem %s3501_s25, 8192  ;;  %p3503_p0 = scmp.lt.s32.totalorder %s4447_s19, %s3501_s25 }
  0x28   : > { %p3504_p1 = scmp.lt.s32.totalorder %s3502_s26, %s3496_s23 }
  0x29   : > { %2960 = vmatpush3.bf16.msra.mxu0 %v3686_v5 }
  0x2a   : > { %2985 = vmatprep.subr.bf16.mxu0 %v3717_v11  ;;  %2976 = vmatpush3.bf16.msra.mxu1 %v3704_v8  ;;  %p3505_p2 = por %p3504_p1, %p3503_p0 }
  0x2b   : > { %3001 = vmatprep.subr.bf16.mxu1 %v3754_v19 }
  0x2c   : > { %2962 = vmatmul.mubr.msk.bf16.vlgmr.msra.gmra.mrb[0].mxu0 %vm444_vm0, %v3712_v10  ;;  %p3506_p3 = pnand %p3505_p2, %p3499_p13 }
  0x2d   : > { %2965 = vmatprep.mubr.msk.bf16.mxu0 %vm444_vm0, %v3722_v12  ;;  %2986 = vmatpush3.bf16.msra.mxu0 %v3717_v11 }
  0x2e   : > { %2987 = vmatprep.subr.bf16.mxu0 %v3727_v13  ;;  %2978 = vmatmul.mubr.msk.bf16.vlgmr.msra.gmra.mrb[0].mxu1 %vm444_vm0, %v3732_v14 }
  0x2f   : > { %2981 = vmatprep.mubr.msk.bf16.mxu1 %vm444_vm0, %v3738_v15  ;;  %3002 = vmatpush3.bf16.msra.mxu1 %v3754_v19 }
  0x30   : > { %3003 = vmatprep.subr.bf16.mxu1 %v3759_v20 }
  0x31   : > { %2988 = vmatpush3.bf16.msra.mxu0 %v3727_v13 }
  0x32   : > { %2989 = vmatprep.subr.bf16.mxu0 %v3745_v17 }
  0x33   : > { %3004 = vmatpush3.bf16.msra.mxu1 %v3759_v20 }
  0x34   : > { %2966 = vmatmul.mubr.msk.bf16.gmra.mrb[4].mxu0 %vm444_vm0, %v3741_v16  ;;  %3005 = vmatprep.subr.bf16.mxu1 %v3775_v23 }
  0x35   : > { %2993 = vmatprep.mubr.msk.bf16.mxu0 %vm444_vm0, %v3749_v18  ;;  %2990 = vmatpush3.bf16.msra.mxu0 %v3745_v17 }
  0x36   : > { %2991 = vmatprep.subr.bf16.mxu0 %v3768_v22  ;;  %2982 = vmatmul.mubr.msk.bf16.gmra.mrb[4].mxu1 %vm444_vm0, %v3763_v21 }
  0x37   : > { %3009 = vmatprep.mubr.msk.bf16.mxu1 %vm444_vm0, %v3781_v24  ;;  %3006 = vmatpush3.bf16.msra.mxu1 %v3775_v23 }
  0x38   : > { %3007 = vmatprep.subr.bf16.mxu1 %v3792_v26 }
  0x39   : > { %2992 = vmatpush3.bf16.msra.mxu0 %v3768_v22 }
  0x3a   : > { %3017 = vmatprep.subr.bf16.mxu0 %v3362_v25 }
  0x3b   : > { %3008 = vmatpush3.bf16.msra.mxu1 %v3792_v26 }
  0x3c   : > { %2994 = vmatmul.mubr.msk.bf16.vlgmr.msra.gmra.mrb[8].mxu0 %vm444_vm0, %v3795_v27 }
  0x3d   : > { %2997 = vmatprep.mubr.msk.bf16.mxu0 %vm444_vm0, %v3801_v28  ;;  %3018 = vmatpush3.bf16.msra.mxu0 %v3362_v25 }
  0x3e   : > { %3010 = vmatmul.mubr.msk.bf16.vlgmr.msra.gmra.mrb[8].mxu1 %vm444_vm0, %v3810_v29  ;;  %3051 = vmatprep.subr.bf16.mxu0 %v3363_v33 }
  0x3f   : > { %3013 = vmatprep.mubr.msk.bf16.mxu1 %vm444_vm0, %v3814_v30 }
  0x44   : > { %2998 = vmatmul.mubr.msk.bf16.gmra.mrb[12].mxu0 %vm444_vm0, %v3817_v31 }
  0x46   : > { %3014 = vmatmul.mubr.msk.bf16.gmra.mrb[12].mxu1 %vm444_vm0, %v3826_v32 }
  0x47   : > { %3093 = vmatprep.mubr.msk.bf16.mxu1 %vm444_vm0, %v3683_v4 }
  0xff   : > { %v2963_v34 = vpop.f32.mrb[0].mxu0 }
 0x100   : > { %v491_v35 = vpop.f32.mrb[1].mxu0 }
 0x101   : > { %v2964_v36 = vpop.f32.mrb[2].mxu0  ;;  %v2979_v40 = vpop.f32.mrb[0].mxu1 }
 0x102   : > { %v886_v37 = vpack.c.bf16 %v2964_v36, %v2963_v34  ;;  %v494_v38 = vpop.f32.mrb[3].mxu0  ;;  %v612_v41 = vpop.f32.mrb[1].mxu1 }
 0x103   : > { %v885_v39 = vpack.c.bf16 %v494_v38, %v491_v35  ;;  %v2980_v42 = vpop.f32.mrb[2].mxu1 }
 0x104   : > { %v890_v43 = vpack.c.bf16 %v2980_v42, %v2979_v40  ;;  %v615_v44 = vpop.f32.mrb[3].mxu1 }
 0x105   : > { %3019 = vmatprep.mubr.msk.bf16.mxu0 %vm911_vm1, %v885_v39  ;;  %v889_v46 = vpack.c.bf16 %v615_v44, %v612_v41 }
 0x106   : > { %3020 = vmatmul.mubr.msk.bf16.vlgmr.msra.gmra.mrb[16].mxu0 %vm911_vm1, %v886_v37 }
 0x107   : > { %v2967_v45 = vpop.f32.mrb[4].mxu0  ;;  %3052 = vmatpush3.bf16.msra.mxu0 %v3363_v33 }
 0x108   : > { %v507_v47 = vpop.f32.mrb[5].mxu0 }
 0x109   : > { %v2968_v48 = vpop.f32.mrb[6].mxu0  ;;  %v2983_v52 = vpop.f32.mrb[4].mxu1 }
 0x10a   : > { %v888_v49 = vpack.c.bf16 %v2968_v48, %v2967_v45  ;;  %v510_v50 = vpop.f32.mrb[7].mxu0  ;;  %v628_v53 = vpop.f32.mrb[5].mxu1 }
 0x10b   : > { %v887_v51 = vpack.c.bf16 %v510_v50, %v507_v47  ;;  %v2984_v54 = vpop.f32.mrb[6].mxu1 }
 0x10c   : > { %v892_v55 = vpack.c.bf16 %v2984_v54, %v2983_v52  ;;  %v631_v56 = vpop.f32.mrb[7].mxu1 }
 0x10d   : > { %3023 = vmatprep.mubr.msk.bf16.mxu0 %vm911_vm1, %v887_v51  ;;  %v891_v57 = vpack.c.bf16 %v631_v56, %v628_v53 }
 0x10e   : > { %3024 = vmatmul.mubr.msk.bf16.gmra.mrb[20].mxu0 %vm911_vm1, %v888_v49 }
 0x10f   : > { %3027 = vmatprep.mubr.msk.bf16.mxu0 %vm911_vm1, %v889_v46  ;;  %v2995_v58 = vpop.f32.mrb[8].mxu0 }
 0x110   : > { %v733_v59 = vpop.f32.mrb[9].mxu0 }
 0x111   : > { %v2996_v60 = vpop.f32.mrb[10].mxu0  ;;  %v3011_v4 = vpop.f32.mrb[8].mxu1 }
 0x112   : > { %v894_v61 = vpack.c.bf16 %v2996_v60, %v2995_v58  ;;  %v736_v62 = vpop.f32.mrb[11].mxu0  ;;  %v854_v25 = vpop.f32.mrb[9].mxu1 }
 0x113   : > { %v893_v63 = vpack.c.bf16 %v736_v62, %v733_v59  ;;  %v3012_v33 = vpop.f32.mrb[10].mxu1 }
 0x114   : > { %v898_v35 = vpack.c.bf16 %v3012_v33, %v3011_v4  ;;  %v857_v36 = vpop.f32.mrb[11].mxu1 }
 0x115   : > { %v897_v38 = vpack.c.bf16 %v857_v36, %v854_v25 }
 0x116   : > { %3028 = vmatmul.mubr.msk.bf16.gmra.mrb[24].mxu0 %vm911_vm1, %v890_v43 }
 0x117   : > { %3031 = vmatprep.mubr.msk.bf16.mxu0 %vm911_vm1, %v891_v57  ;;  %v2999_v34 = vpop.f32.mrb[12].mxu0 }
 0x118   : > { %v749_v37 = vpop.f32.mrb[13].mxu0 }
 0x119   : > { %v3000_v39 = vpop.f32.mrb[14].mxu0  ;;  %v3015_v44 = vpop.f32.mrb[12].mxu1 }
 0x11a   : > { %v896_v40 = vpack.c.bf16 %v3000_v39, %v2999_v34  ;;  %v752_v41 = vpop.f32.mrb[15].mxu0  ;;  %v870_v45 = vpop.f32.mrb[13].mxu1 }
 0x11b   : > { %v895_v42 = vpack.c.bf16 %v752_v41, %v749_v37  ;;  %v3016_v43 = vpop.f32.mrb[14].mxu1 }
 0x11c   : > { %v900_v46 = vpack.c.bf16 %v3016_v43, %v3015_v44  ;;  %v873_v47 = vpop.f32.mrb[15].mxu1 }
 0x11d   : > { %v899_v48 = vpack.c.bf16 %v873_v47, %v870_v45 }
 0x11e   : > { %3032 = vmatmul.mubr.msk.bf16.gmra.mrb[28].mxu0 %vm911_vm1, %v892_v55 }
 0x11f   : > { %3035 = vmatprep.mubr.msk.bf16.mxu0 %vm911_vm1, %v893_v63 }
 0x126   : > { %3036 = vmatmul.mubr.msk.bf16.gmra.mrb[32].mxu0 %vm911_vm1, %v894_v61 }
 0x127   : > { %3039 = vmatprep.mubr.msk.bf16.mxu0 %vm911_vm1, %v895_v42 }
 0x12e   : > { %3040 = vmatmul.mubr.msk.bf16.gmra.mrb[36].mxu0 %vm911_vm1, %v896_v40 }
 0x12f   : > { %3043 = vmatprep.mubr.msk.bf16.mxu0 %vm911_vm1, %v897_v38 }
 0x136   : > { %3044 = vmatmul.mubr.msk.bf16.gmra.mrb[40].mxu0 %vm911_vm1, %v898_v35 }
 0x137   : > { %3047 = vmatprep.mubr.msk.bf16.mxu0 %vm911_vm1, %v899_v48 }
 0x13e   : > { %3048 = vmatmul.mubr.msk.bf16.gmra.mrb[44].mxu0 %vm911_vm1, %v900_v46 }
 0x13f   : > { %3053 = vmatprep.mubr.msk.bf16.mxu0 %vm911_vm1, %v3663_v0  ;;  %v3886_v0 = vld [vmem:[%s4500_s6] sm:$0xff]  }
 0x140   : > { %3149 = vmatprep.subr.bf16.mxu0 %v3886_v0 }
 0x146   : > { %3054 = vmatmul.mubr.msk.bf16.vlgmr.msra.gmra.mrb[16].mxu0 %vm911_vm1, %v3666_v1  ;;  %v3893_v1 = vld [vmem:[%s4498_s4] ss:$0 sm:$0xff] }
 0x147   : > { %3057 = vmatprep.mubr.msk.bf16.mxu0 %vm911_vm1, %v3676_v2  ;;  %3150 = vmatpush3.bf16.msra.mxu0 %v3886_v0 }
 0x14e   : > { %3058 = vmatmul.mubr.msk.bf16.gmra.mrb[20].mxu0 %vm911_vm1, %v3686_v5 }
 0x14f   : > { %3061 = vmatprep.mubr.msk.bf16.mxu0 %vm911_vm1, %v3680_v3 }
 0x156   : > { %3062 = vmatmul.mubr.msk.bf16.gmra.mrb[24].mxu0 %vm911_vm1, %v3692_v6 }
 0x157   : > { %3065 = vmatprep.mubr.msk.bf16.mxu0 %vm911_vm1, %v3698_v7 }
 0x15e   : > { %3066 = vmatmul.mubr.msk.bf16.gmra.mrb[28].mxu0 %vm911_vm1, %v3704_v8 }
 0x15f   : > { %3069 = vmatprep.mubr.msk.bf16.mxu0 %vm911_vm1, %v3717_v11 }
 0x166   : > { %3070 = vmatmul.mubr.msk.bf16.gmra.mrb[32].mxu0 %vm911_vm1, %v3727_v13 }
 0x167   : > { %3073 = vmatprep.mubr.msk.bf16.mxu0 %vm911_vm1, %v3745_v17 }
 0x16e   : > { %3074 = vmatmul.mubr.msk.bf16.gmra.mrb[36].mxu0 %vm911_vm1, %v3768_v22 }
 0x16f   : > { %3077 = vmatprep.mubr.msk.bf16.mxu0 %vm911_vm1, %v3754_v19 }
 0x176   : > { %3078 = vmatmul.mubr.msk.bf16.gmra.mrb[40].mxu0 %vm911_vm1, %v3759_v20 }
 0x177   : > { %3081 = vmatprep.mubr.msk.bf16.mxu0 %vm911_vm1, %v3775_v23 }
 0x17e   : > { %3082 = vmatmul.mubr.msk.bf16.gmra.mrb[44].mxu0 %vm911_vm1, %v3792_v26 }
 0x219   : > { %v3055_v2 = vpop.f32.mrb[16].mxu0 }
 0x21a   : > { %v1345_v3 = vadd.f32 %v3055_v2, %v3893_v1  ;;  %v1209_v5 = vpop.f32.mrb[17].mxu0 }
 0x21b   : > { %v1343_v6 = vadd.f32 %v3893_v1, %v1209_v5  ;;  %v3056_v7 = vpop.f32.mrb[18].mxu0 }
 0x21c   : > { %v1346_v8 = vadd.f32 %v3056_v7, %v3893_v1  ;;  %v1212_v11 = vpop.f32.mrb[19].mxu0  ;;  %v1377_v17 = vmax.f32 %v1345_v3, 0.0 }
 0x21d   : > { %v1344_v13 = vadd.f32 %v3893_v1, %v1212_v11  ;;  %v1375_v20 = vmax.f32 %v1343_v6, 0.0 }
 0x21e   : > { %v1378_v19 = vmax.f32 %v1346_v8, 0.0 }
 0x21f   : > { %v1376_v22 = vmax.f32 %v1344_v13, 0.0 }
 0x220   : > { %v3899_v23 = vpack.c.bf16 %v1378_v19, %v1377_v17 }
 0x221   : > { %v3901_v26 = vpack.c.bf16 %v1376_v22, %v1375_v20  ;;  %v3059_v49 = vpop.f32.mrb[20].mxu0 }
 0x222   : > { %v1349_v50 = vadd.f32 %v3059_v49, %v3893_v1  ;;  %v1225_v51 = vpop.f32.mrb[21].mxu0 }
 0x223   : > { %v1347_v52 = vadd.f32 %v3893_v1, %v1225_v51  ;;  %v3060_v53 = vpop.f32.mrb[22].mxu0  ;;  %3085 = vmatprep.subr.bf16.mxu1 %v3901_v26 }
 0x224   : > { %v1350_v54 = vadd.f32 %v3060_v53, %v3893_v1  ;;  %v1228_v55 = vpop.f32.mrb[23].mxu0  ;;  %3086 = vmatpush3.bf16.msra.mxu1 %v3901_v26  ;;  %v1381_v57 = vmax.f32 %v1349_v50, 0.0 }
 0x225   : > { %v1348_v56 = vadd.f32 %v3893_v1, %v1228_v55  ;;  %3087 = vmatprep.subr.bf16.mxu1 %v3899_v23  ;;  %v1379_v59 = vmax.f32 %v1347_v52, 0.0 }
 0x226   : > { %v1382_v58 = vmax.f32 %v1350_v54, 0.0 }
 0x227   : > { %v1380_v60 = vmax.f32 %v1348_v56, 0.0 }
 0x228   : > { %v3910_v61 = vpack.c.bf16 %v1382_v58, %v1381_v57  ;;  %3088 = vmatpush3.bf16.msra.mxu1 %v3899_v23 }
 0x229   : > { %v3913_v62 = vpack.c.bf16 %v1380_v60, %v1379_v59  ;;  %v3063_v63 = vpop.f32.mrb[24].mxu0 }
 0x22a   : > { %v1353_v4 = vadd.f32 %v3063_v63, %v3893_v1  ;;  %v1241_v25 = vpop.f32.mrb[25].mxu0 }
 0x22b   : > { %v1351_v33 = vadd.f32 %v3893_v1, %v1241_v25  ;;  %v3064_v34 = vpop.f32.mrb[26].mxu0  ;;  %3089 = vmatprep.subr.bf16.mxu1 %v3913_v62 }
 0x22c   : > { %v1354_v35 = vadd.f32 %v3064_v34, %v3893_v1  ;;  %v1244_v36 = vpop.f32.mrb[27].mxu0  ;;  %3090 = vmatpush3.bf16.msra.mxu1 %v3913_v62  ;;  %v1385_v38 = vmax.f32 %v1353_v4, 0.0 }
 0x22d   : > { %v1352_v37 = vadd.f32 %v3893_v1, %v1244_v36  ;;  %3091 = vmatprep.subr.bf16.mxu1 %v3910_v61  ;;  %v1383_v40 = vmax.f32 %v1351_v33, 0.0 }
 0x22e   : > { %v1386_v39 = vmax.f32 %v1354_v35, 0.0 }
 0x22f   : > { %v1384_v41 = vmax.f32 %v1352_v37, 0.0 }
 0x230   : > { %v3922_v42 = vpack.c.bf16 %v1386_v39, %v1385_v38  ;;  %3092 = vmatpush3.bf16.msra.mxu1 %v3910_v61 }
 0x231   : > { %v3925_v44 = vpack.c.bf16 %v1384_v41, %v1383_v40  ;;  %v3067_v45 = vpop.f32.mrb[28].mxu0 }
 0x232   : > { %v1357_v43 = vadd.f32 %v3067_v45, %v3893_v1  ;;  %v1257_v46 = vpop.f32.mrb[29].mxu0 }
 0x233   : > { %v1355_v47 = vadd.f32 %v3893_v1, %v1257_v46  ;;  %v3068_v48 = vpop.f32.mrb[30].mxu0  ;;  %3094 = vmatmul.mubr.msk.bf16.vlgmr.msra.gmra.mrb[16].mxu1 %vm444_vm0, %v3712_v10  ;;  %3101 = vmatprep.subr.bf16.mxu1 %v3925_v44 }
 0x234   : > { %v1358_v2 = vadd.f32 %v3068_v48, %v3893_v1  ;;  %v1260_v3 = vpop.f32.mrb[31].mxu0  ;;  %3102 = vmatpush3.bf16.msra.mxu1 %v3925_v44  ;;  %3097 = vmatprep.mubr.msk.bf16.mxu1 %vm444_vm0, %v3722_v12  ;;  %v1389_v6 = vmax.f32 %v1357_v43, 0.0 }
 0x235   : > { %v1356_v5 = vadd.f32 %v3893_v1, %v1260_v3  ;;  %3103 = vmatprep.subr.bf16.mxu1 %v3922_v42  ;;  %v1387_v8 = vmax.f32 %v1355_v47, 0.0 }
 0x236   : > { %v1390_v7 = vmax.f32 %v1358_v2, 0.0 }
 0x237   : > { %v1388_v11 = vmax.f32 %v1356_v5, 0.0 }
 0x238   : > { %v3938_v13 = vpack.c.bf16 %v1390_v7, %v1389_v6  ;;  %3104 = vmatpush3.bf16.msra.mxu1 %v3922_v42 }
 0x239   : > { %v3941_v10 = vpack.c.bf16 %v1388_v11, %v1387_v8  ;;  %v3071_v17 = vpop.f32.mrb[32].mxu0 }
 0x23a   : > { %v1361_v19 = vadd.f32 %v3071_v17, %v3893_v1  ;;  %v1273_v20 = vpop.f32.mrb[33].mxu0 }
 0x23b   : > { %v1359_v12 = vadd.f32 %v3893_v1, %v1273_v20  ;;  %v3072_v22 = vpop.f32.mrb[34].mxu0  ;;  %3098 = vmatmul.mubr.msk.bf16.gmra.mrb[20].mxu1 %vm444_vm0, %v3741_v16  ;;  %3105 = vmatprep.subr.bf16.mxu1 %v3941_v10 }
 0x23c   : > { %v1362_v49 = vadd.f32 %v3072_v22, %v3893_v1  ;;  %v1276_v50 = vpop.f32.mrb[35].mxu0  ;;  %3106 = vmatpush3.bf16.msra.mxu1 %v3941_v10  ;;  %3109 = vmatprep.mubr.msk.bf16.mxu1 %vm444_vm0, %v3709_v9  ;;  %v1393_v52 = vmax.f32 %v1361_v19, 0.0 }
 0x23d   : > { %v1360_v51 = vadd.f32 %v3893_v1, %v1276_v50  ;;  %3107 = vmatprep.subr.bf16.mxu1 %v3938_v13  ;;  %v1391_v54 = vmax.f32 %v1359_v12, 0.0 }
 0x23e   : > { %v1394_v53 = vmax.f32 %v1362_v49, 0.0 }
 0x23f   : > { %v1392_v55 = vmax.f32 %v1360_v51, 0.0 }
 0x240   : > { %v3954_v56 = vpack.c.bf16 %v1394_v53, %v1393_v52  ;;  %3108 = vmatpush3.bf16.msra.mxu1 %v3938_v13 }
 0x241   : > { %v3957_v16 = vpack.c.bf16 %v1392_v55, %v1391_v54  ;;  %v3075_v57 = vpop.f32.mrb[36].mxu0 }
 0x242   : > { %v1365_v58 = vadd.f32 %v3075_v57, %v3893_v1  ;;  %v1289_v59 = vpop.f32.mrb[37].mxu0 }
 0x243   : > { %v1363_v9 = vadd.f32 %v3893_v1, %v1289_v59  ;;  %v3076_v60 = vpop.f32.mrb[38].mxu0  ;;  %3110 = vmatmul.mubr.msk.bf16.vlgmr.msra.gmra.mrb[24].mxu1 %vm444_vm0, %v3732_v14  ;;  %3117 = vmatprep.subr.bf16.mxu1 %v3957_v16 }
 0x244   : > { %v1366_v63 = vadd.f32 %v3076_v60, %v3893_v1  ;;  %v1292_v4 = vpop.f32.mrb[39].mxu0  ;;  %3118 = vmatpush3.bf16.msra.mxu1 %v3957_v16  ;;  %3113 = vmatprep.mubr.msk.bf16.mxu1 %vm444_vm0, %v3738_v15  ;;  %v1397_v33 = vmax.f32 %v1365_v58, 0.0 }
 0x245   : > { %v1364_v25 = vadd.f32 %v3893_v1, %v1292_v4  ;;  %3119 = vmatprep.subr.bf16.mxu1 %v3954_v56  ;;  %v1395_v35 = vmax.f32 %v1363_v9, 0.0 }
 0x246   : > { %v1398_v34 = vmax.f32 %v1366_v63, 0.0 }
 0x247   : > { %v1396_v36 = vmax.f32 %v1364_v25, 0.0 }
 0x248   : > { %v3970_v37 = vpack.c.bf16 %v1398_v34, %v1397_v33  ;;  %3120 = vmatpush3.bf16.msra.mxu1 %v3954_v56 }
 0x249   : > { %v3973_v14 = vpack.c.bf16 %v1396_v36, %v1395_v35  ;;  %v3079_v38 = vpop.f32.mrb[40].mxu0 }
 0x24a   : > { %v1369_v39 = vadd.f32 %v3079_v38, %v3893_v1  ;;  %v1305_v40 = vpop.f32.mrb[41].mxu0 }
 0x24b   : > { %v1367_v15 = vadd.f32 %v3893_v1, %v1305_v40  ;;  %v3080_v41 = vpop.f32.mrb[42].mxu0  ;;  %3114 = vmatmul.mubr.msk.bf16.gmra.mrb[28].mxu1 %vm444_vm0, %v3763_v21  ;;  %3121 = vmatprep.subr.bf16.mxu1 %v3973_v14 }
 0x24c   : > { %v1370_v45 = vadd.f32 %v3080_v41, %v3893_v1  ;;  %v1308_v43 = vpop.f32.mrb[43].mxu0  ;;  %3122 = vmatpush3.bf16.msra.mxu1 %v3973_v14  ;;  %3125 = vmatprep.mubr.msk.bf16.mxu1 %vm444_vm0, %v3749_v18  ;;  %v1401_v47 = vmax.f32 %v1369_v39, 0.0 }
 0x24d   : > { %v1368_v46 = vadd.f32 %v3893_v1, %v1308_v43  ;;  %3123 = vmatprep.subr.bf16.mxu1 %v3970_v37  ;;  %v1399_v2 = vmax.f32 %v1367_v15, 0.0 }
 0x24e   : > { %v1402_v48 = vmax.f32 %v1370_v45, 0.0 }
 0x24f   : > { %v1400_v3 = vmax.f32 %v1368_v46, 0.0 }
 0x250   : > { %v3986_v5 = vpack.c.bf16 %v1402_v48, %v1401_v47  ;;  %3124 = vmatpush3.bf16.msra.mxu1 %v3970_v37  ;;  %v3367_v47 = vld [vmem:[%s4499_s5 + $0x8] sm:$0xff]  }
 0x251   : > { %v3989_v21 = vpack.c.bf16 %v1400_v3, %v1399_v2  ;;  %v3083_v6 = vpop.f32.mrb[44].mxu0 }
 0x252   : > { %v1373_v7 = vadd.f32 %v3083_v6, %v3893_v1  ;;  %v1321_v8 = vpop.f32.mrb[45].mxu0 }
 0x253   : > { %v1371_v18 = vadd.f32 %v3893_v1, %v1321_v8  ;;  %v3084_v11 = vpop.f32.mrb[46].mxu0  ;;  %3126 = vmatmul.mubr.msk.bf16.vlgmr.msra.gmra.mrb[32].mxu1 %vm444_vm0, %v3795_v27  ;;  %3133 = vmatprep.subr.bf16.mxu1 %v3989_v21 }
 0x254   : > { %v1374_v17 = vadd.f32 %v3084_v11, %v3893_v1  ;;  %v1324_v19 = vpop.f32.mrb[47].mxu0  ;;  %3134 = vmatpush3.bf16.msra.mxu1 %v3989_v21  ;;  %3129 = vmatprep.mubr.msk.bf16.mxu1 %vm444_vm0, %v3801_v28  ;;  %v1405_v12 = vmax.f32 %v1373_v7, 0.0  ;;  %v3366_v28 = vld [vmem:[%s4499_s5] sm:$0xff]  }
 0x255   : > { %v1372_v20 = vadd.f32 %v3893_v1, %v1324_v19  ;;  %3135 = vmatprep.subr.bf16.mxu1 %v3986_v5  ;;  %v1403_v49 = vmax.f32 %v1371_v18, 0.0 }
 0x256   : > { %v1406_v22 = vmax.f32 %v1374_v17, 0.0 }
 0x257   : > { %v1404_v50 = vmax.f32 %v1372_v20, 0.0 }
 0x258   : > { %v4002_v51 = vpack.c.bf16 %v1406_v22, %v1405_v12  ;;  %3136 = vmatpush3.bf16.msra.mxu1 %v3986_v5 }
 0x259   : > { %v4005_v27 = vpack.c.bf16 %v1404_v50, %v1403_v49 }
 0x25b   : > { %3130 = vmatmul.mubr.msk.bf16.gmra.mrb[36].mxu1 %vm444_vm0, %v3817_v31  ;;  %3137 = vmatprep.subr.bf16.mxu1 %v4005_v27 }
 0x25c   : > { %3138 = vmatpush3.bf16.msra.mxu1 %v4005_v27  ;;  %3141 = vmatprep.mubr.msk.bf16.mxu1 %vm444_vm0, %v3781_v24  ;;  %v3365_v24 = vld [vmem:[%s4500_s6 + $0x8] sm:$0xff]  }
 0x25d   : > { %3139 = vmatprep.subr.bf16.mxu1 %v4002_v51  ;;  %3151 = vmatprep.subr.bf16.mxu0 %v3365_v24 }
 0x25e   : > { %3152 = vmatpush3.bf16.msra.mxu0 %v3365_v24 }
 0x260   : > { %3140 = vmatpush3.bf16.msra.mxu1 %v4002_v51 }
 0x261   : > { %3221 = vmatprep.subr.bf16.mxu1 %v3886_v0 }
 0x263   : > { %3142 = vmatmul.mubr.msk.bf16.vlgmr.msra.gmra.mrb[40].mxu1 %vm444_vm0, %v3810_v29 }
 0x264   : > { %3145 = vmatprep.mubr.msk.bf16.mxu1 %vm444_vm0, %v3814_v30  ;;  %3223 = vmatpush3.bf16.msra.mxu1 %v3886_v0 }
 0x265   : > { %3222 = vmatprep.subr.bf16.mxu1 %v3365_v24 }
 0x268   : > { %3224 = vmatpush3.bf16.msra.mxu1 %v3365_v24 }
 0x269   : > { %3185 = vmatprep.subr.bf16.mxu1 %v3366_v28 }
 0x26b   : > { %3146 = vmatmul.mubr.msk.bf16.gmra.mrb[44].mxu1 %vm444_vm0, %v3826_v32 }
 0x306   : > { %v3095_v29 = vpop.f32.mrb[16].mxu1 }
 0x307   : > { %v1457_v30 = vpop.f32.mrb[17].mxu1 }
 0x308   : > { %v3096_v31 = vpop.f32.mrb[18].mxu1 }
 0x309   : > { %v1684_v0 = vpack.c.bf16 %v3096_v31, %v3095_v29  ;;  %v1460_v1 = vpop.f32.mrb[19].mxu1 }
 0x30a   : > { %v1683_v32 = vpack.c.bf16 %v1460_v1, %v1457_v30 }
 0x30c   : > { %3153 = vmatprep.mubr.msk.bf16.mxu0 %vm1719_vm2, %v1683_v32 }
 0x30d   : > { %3154 = vmatmul.mubr.msk.bf16.vlgmr.msra.gmra.mrb[48].mxu0 %vm1719_vm2, %v1684_v0 }
 0x30e   : > { %v3099_v52 = vpop.f32.mrb[20].mxu1 }
 0x30f   : > { %v1473_v53 = vpop.f32.mrb[21].mxu1 }
 0x310   : > { %v3100_v54 = vpop.f32.mrb[22].mxu1 }
 0x311   : > { %v1686_v55 = vpack.c.bf16 %v3100_v54, %v3099_v52  ;;  %v1476_v57 = vpop.f32.mrb[23].mxu1 }
 0x312   : > { %v1685_v58 = vpack.c.bf16 %v1476_v57, %v1473_v53 }
 0x314   : > { %3157 = vmatprep.mubr.msk.bf16.mxu0 %vm1719_vm2, %v1685_v58 }
 0x315   : > { %3158 = vmatmul.mubr.msk.bf16.gmra.mrb[52].mxu0 %vm1719_vm2, %v1686_v55 }
 0x316   : > { %v3111_v59 = vpop.f32.mrb[24].mxu1 }
 0x317   : > { %v1522_v9 = vpop.f32.mrb[25].mxu1 }
 0x318   : > { %v3112_v60 = vpop.f32.mrb[26].mxu1 }
 0x319   : > { %v1688_v63 = vpack.c.bf16 %v3112_v60, %v3111_v59  ;;  %v1525_v4 = vpop.f32.mrb[27].mxu1 }
 0x31a   : > { %v1687_v25 = vpack.c.bf16 %v1525_v4, %v1522_v9 }
 0x31c   : > { %3161 = vmatprep.mubr.msk.bf16.mxu0 %vm1719_vm2, %v1687_v25 }
 0x31d   : > { %3162 = vmatmul.mubr.msk.bf16.gmra.mrb[56].mxu0 %vm1719_vm2, %v1688_v63 }
 0x31e   : > { %v3115_v33 = vpop.f32.mrb[28].mxu1 }
 0x31f   : > { %v1538_v34 = vpop.f32.mrb[29].mxu1 }
 0x320   : > { %v3116_v35 = vpop.f32.mrb[30].mxu1 }
 0x321   : > { %v1690_v36 = vpack.c.bf16 %v3116_v35, %v3115_v33  ;;  %v1541_v38 = vpop.f32.mrb[31].mxu1 }
 0x322   : > { %v1689_v39 = vpack.c.bf16 %v1541_v38, %v1538_v34 }
 0x324   : > { %3165 = vmatprep.mubr.msk.bf16.mxu0 %vm1719_vm2, %v1689_v39 }
 0x325   : > { %3166 = vmatmul.mubr.msk.bf16.gmra.mrb[60].mxu0 %vm1719_vm2, %v1690_v36 }
 0x326   : > { %v3127_v40 = vpop.f32.mrb[32].mxu1 }
 0x327   : > { %v1587_v15 = vpop.f32.mrb[33].mxu1 }
 0x328   : > { %v3128_v41 = vpop.f32.mrb[34].mxu1 }
 0x329   : > { %v1692_v45 = vpack.c.bf16 %v3128_v41, %v3127_v40  ;;  %v1590_v43 = vpop.f32.mrb[35].mxu1 }
 0x32a   : > { %v1691_v46 = vpack.c.bf16 %v1590_v43, %v1587_v15 }
 0x32c   : > { %3169 = vmatprep.mubr.msk.bf16.mxu1 %vm1719_vm2, %v1691_v46 }
 0x32d   : > { %3170 = vmatmul.mubr.msk.bf16.vlgmr.msra.gmra.mrb[48].mxu1 %vm1719_vm2, %v1692_v45 }
 0x32e   : > { %v3131_v48 = vpop.f32.mrb[36].mxu1  ;;  %3186 = vmatpush3.bf16.msra.mxu1 %v3366_v28 }
 0x32f   : > { %v1603_v2 = vpop.f32.mrb[37].mxu1  ;;  %3187 = vmatprep.subr.bf16.mxu1 %v3367_v47 }
 0x330   : > { %v3132_v3 = vpop.f32.mrb[38].mxu1 }
 0x331   : > { %v1694_v6 = vpack.c.bf16 %v3132_v3, %v3131_v48  ;;  %v1606_v7 = vpop.f32.mrb[39].mxu1 }
 0x332   : > { %v1693_v8 = vpack.c.bf16 %v1606_v7, %v1603_v2  ;;  %3188 = vmatpush3.bf16.msra.mxu1 %v3367_v47 }
 0x334   : > { %3173 = vmatprep.mubr.msk.bf16.mxu1 %vm1719_vm2, %v1693_v8 }
 0x335   : > { %3174 = vmatmul.mubr.msk.bf16.gmra.mrb[52].mxu1 %vm1719_vm2, %v1694_v6 }
 0x336   : > { %v3143_v18 = vpop.f32.mrb[40].mxu1 }
 0x337   : > { %v1652_v11 = vpop.f32.mrb[41].mxu1 }
 0x338   : > { %v3144_v17 = vpop.f32.mrb[42].mxu1 }
 0x339   : > { %v1696_v19 = vpack.c.bf16 %v3144_v17, %v3143_v18  ;;  %v1655_v20 = vpop.f32.mrb[43].mxu1 }
 0x33a   : > { %v1695_v12 = vpack.c.bf16 %v1655_v20, %v1652_v11 }
 0x33c   : > { %3177 = vmatprep.mubr.msk.bf16.mxu1 %vm1719_vm2, %v1695_v12 }
 0x33d   : > { %3178 = vmatmul.mubr.msk.bf16.gmra.mrb[56].mxu1 %vm1719_vm2, %v1696_v19 }
 0x33e   : > { %v3147_v22 = vpop.f32.mrb[44].mxu1 }
 0x33f   : > { %v1668_v49 = vpop.f32.mrb[45].mxu1 }
 0x340   : > { %v3148_v50 = vpop.f32.mrb[46].mxu1 }
 0x341   : > { %v1698_v24 = vpack.c.bf16 %v3148_v50, %v3147_v22  ;;  %v1671_v28 = vpop.f32.mrb[47].mxu1 }
 0x342   : > { %v1697_v29 = vpack.c.bf16 %v1671_v28, %v1668_v49 }
 0x344   : > { %3181 = vmatprep.mubr.msk.bf16.mxu1 %vm1719_vm2, %v1697_v29 }
 0x345   : > { %3182 = vmatmul.mubr.msk.bf16.gmra.mrb[60].mxu1 %vm1719_vm2, %v1698_v24 }
 0x346   : > { %3189 = vmatprep.mubr.msk.bf16.mxu1 %vm1719_vm2, %v3901_v26 }
 0x34d   : > { %3190 = vmatmul.mubr.msk.bf16.vlgmr.msra.gmra.mrb[64].mxu1 %vm1719_vm2, %v3899_v23 }
 0x34e   : > { %3193 = vmatprep.mubr.msk.bf16.mxu1 %vm1719_vm2, %v3913_v62 }
 0x355   : > { %3194 = vmatmul.mubr.msk.bf16.gmra.mrb[68].mxu1 %vm1719_vm2, %v3910_v61 }
 0x356   : > { %3197 = vmatprep.mubr.msk.bf16.mxu1 %vm1719_vm2, %v3925_v44 }
 0x35d   : > { %3198 = vmatmul.mubr.msk.bf16.gmra.mrb[72].mxu1 %vm1719_vm2, %v3922_v42 }
 0x35e   : > { %3201 = vmatprep.mubr.msk.bf16.mxu1 %vm1719_vm2, %v3941_v10 }
 0x365   : > { %3202 = vmatmul.mubr.msk.bf16.gmra.mrb[76].mxu1 %vm1719_vm2, %v3938_v13 }
 0x366   : > { %3205 = vmatprep.mubr.msk.bf16.mxu1 %vm1719_vm2, %v3957_v16 }
 0x36d   : > { %3206 = vmatmul.mubr.msk.bf16.gmra.mrb[48].mxu1 %vm1719_vm2, %v3954_v56 }
 0x36e   : > { %3209 = vmatprep.mubr.msk.bf16.mxu1 %vm1719_vm2, %v3973_v14 }
 0x375   : > { %3210 = vmatmul.mubr.msk.bf16.gmra.mrb[52].mxu1 %vm1719_vm2, %v3970_v37 }
 0x376   : > { %3213 = vmatprep.mubr.msk.bf16.mxu1 %vm1719_vm2, %v3989_v21 }
 0x37d   : > { %3214 = vmatmul.mubr.msk.bf16.gmra.mrb[56].mxu1 %vm1719_vm2, %v3986_v5 }
 0x37e   : > { %3217 = vmatprep.mubr.msk.bf16.mxu1 %vm1719_vm2, %v4005_v27 }
 0x385   : > { %3218 = vmatmul.mubr.msk.bf16.gmra.mrb[60].mxu1 %vm1719_vm2, %v4002_v51  ;;  %v4083_v51 = vld [vmem:[%s4501_s7] ss:$0 sm:$0xff] }
 0x3e0   : > { %v3155_v23 = vpop.f32.mrb[48].mxu0 }
 0x3e1   : > { %v1802_v26 = vpop.f32.mrb[49].mxu0 }
 0x3e2   : > { %v3156_v61 = vpop.f32.mrb[50].mxu0 }
 0x3e3   : > { %v1805_v62 = vpop.f32.mrb[51].mxu0 }
 0x3e8   : > { %v3159_v42 = vpop.f32.mrb[52].mxu0 }
 0x3e9   : > { %v1818_v44 = vpop.f32.mrb[53].mxu0 }
 0x3ea   : > { %v3160_v13 = vpop.f32.mrb[54].mxu0 }
 0x3eb   : > { %v1821_v10 = vpop.f32.mrb[55].mxu0 }
 0x3f0   : > { %v3163_v56 = vpop.f32.mrb[56].mxu0 }
 0x3f1   : > { %v1834_v16 = vpop.f32.mrb[57].mxu0 }
 0x3f2   : > { %v3164_v37 = vpop.f32.mrb[58].mxu0 }
 0x3f3   : > { %v1837_v14 = vpop.f32.mrb[59].mxu0 }
 0x3f8   : > { %v3167_v21 = vpop.f32.mrb[60].mxu0 }
 0x3f9   : > { %v1850_v5 = vpop.f32.mrb[61].mxu0 }
 0x3fa   : > { %v3168_v30 = vpop.f32.mrb[62].mxu0 }
 0x3fb   : > { %v1853_v31 = vpop.f32.mrb[63].mxu0 }
 0x420   : > { %v3191_v27 = vpop.f32.mrb[64].mxu1 }
 0x421   : > { %v2032_v0 = vadd.f32 %v3191_v27, %v3155_v23  ;;  %v2023_v1 = vpop.f32.mrb[65].mxu1 }
 0x422   : > { %v2024_v32 = vadd.f32 %v2023_v1, %v1802_v26  ;;  %v3192_v52 = vpop.f32.mrb[66].mxu1 }
 0x423   : > { %v4086_v53 = vadd.f32 %v4083_v51, %v2032_v0  ;;  %v2035_v54 = vadd.f32 %v3192_v52, %v3156_v61  ;;  %v2026_v55 = vpop.f32.mrb[67].mxu1 }
 0x424   : > { %v4089_v57 = vadd.f32 %v4083_v51, %v2024_v32  ;;  %v2027_v58 = vadd.f32 %v2026_v55, %v1805_v62 }
 0x425   : > { %2193 = vmax.xlane.f32.xlu1 %v4086_v53  ;;  %v4094_v59 = vadd.f32 %v4083_v51, %v2035_v54 }
 0x426   : > { %2189 = vmax.xlane.f32.xlu0 %v4089_v57  ;;  %v4097_v9 = vadd.f32 %v4083_v51, %v2027_v58 }
 0x428   : > { %v3195_v60 = vpop.f32.mrb[68].mxu1 }
 0x429   : > { %v2048_v63 = vadd.f32 %v3195_v60, %v3159_v42  ;;  %2195 = vmax.xlane.f32.xlu1 %v4094_v59  ;;  %v2039_v4 = vpop.f32.mrb[69].mxu1 }
 0x42a   : > { %v2040_v25 = vadd.f32 %v2039_v4, %v1818_v44  ;;  %v3196_v33 = vpop.f32.mrb[70].mxu1  ;;  %2191 = vmax.xlane.f32.xlu0 %v4097_v9 }
 0x42b   : > { %v4102_v34 = vadd.f32 %v4083_v51, %v2048_v63  ;;  %v2051_v35 = vadd.f32 %v3196_v33, %v3160_v13  ;;  %v2042_v36 = vpop.f32.mrb[71].mxu1 }
 0x42c   : > { %v2043_v38 = vadd.f32 %v2042_v36, %v1821_v10  ;;  %v4110_v40 = vadd.f32 %v4083_v51, %v2040_v25 }
 0x42d   : > { %v4105_v39 = vadd.f32 %v4083_v51, %v2051_v35 }
 0x42e   : > { %2201 = vmax.xlane.f32.xlu0 %v4102_v34  ;;  %v4113_v41 = vadd.f32 %v4083_v51, %v2043_v38 }
 0x42f   : > { %2203 = vmax.xlane.f32.xlu1 %v4105_v39 }
 0x430   : > { %v3199_v15 = vpop.f32.mrb[72].mxu1 }
 0x431   : > { %v2064_v45 = vadd.f32 %v3199_v15, %v3163_v56  ;;  %v2055_v43 = vpop.f32.mrb[73].mxu1 }
 0x432   : > { %v2056_v46 = vadd.f32 %v2055_v43, %v1834_v16  ;;  %v3200_v47 = vpop.f32.mrb[74].mxu1  ;;  %2197 = vmax.xlane.f32.xlu0 %v4110_v40 }
 0x433   : > { %v4117_v48 = vadd.f32 %v4083_v51, %v2064_v45  ;;  %v2067_v2 = vadd.f32 %v3200_v47, %v3164_v37  ;;  %v2058_v3 = vpop.f32.mrb[75].mxu1  ;;  %2199 = vmax.xlane.f32.xlu1 %v4113_v41 }
 0x434   : > { %v2059_v6 = vadd.f32 %v2058_v3, %v1837_v14  ;;  %v4126_v8 = vadd.f32 %v4083_v51, %v2056_v46 }
 0x435   : > { %v4121_v7 = vadd.f32 %v4083_v51, %v2067_v2 }
 0x436   : > { %2209 = vmax.xlane.f32.xlu0 %v4117_v48  ;;  %v4129_v11 = vadd.f32 %v4083_v51, %v2059_v6 }
 0x437   : > { %2211 = vmax.xlane.f32.xlu1 %v4121_v7 }
 0x438   : > { %v3203_v18 = vpop.f32.mrb[76].mxu1 }
 0x439   : > { %v2080_v17 = vadd.f32 %v3203_v18, %v3167_v21  ;;  %v2071_v19 = vpop.f32.mrb[77].mxu1 }
 0x43a   : > { %v2072_v20 = vadd.f32 %v2071_v19, %v1850_v5  ;;  %v3204_v12 = vpop.f32.mrb[78].mxu1  ;;  %2205 = vmax.xlane.f32.xlu0 %v4126_v8 }
 0x43b   : > { %v4133_v22 = vadd.f32 %v4083_v51, %v2080_v17  ;;  %v2083_v49 = vadd.f32 %v3204_v12, %v3168_v30  ;;  %v2074_v50 = vpop.f32.mrb[79].mxu1  ;;  %2207 = vmax.xlane.f32.xlu1 %v4129_v11 }
 0x43c   : > { %v2075_v24 = vadd.f32 %v2074_v50, %v1853_v31  ;;  %v4142_v29 = vadd.f32 %v4083_v51, %v2072_v20 }
 0x43d   : > { %v4137_v28 = vadd.f32 %v4083_v51, %v2083_v49 }
 0x43e   : > { %2217 = vmax.xlane.f32.xlu0 %v4133_v22  ;;  %v4145_v26 = vadd.f32 %v4083_v51, %v2075_v24 }
 0x43f   : > { %2219 = vmax.xlane.f32.xlu1 %v4137_v28 }
 0x440   : > { %v3207_v23 = vpop.f32.mrb[48].mxu1 }
 0x441   : > { %v2087_v61 = vpop.f32.mrb[49].mxu1  ;;  %v4150_v44 = vadd.f32 %v3207_v23, %v4083_v51 }
 0x442   : > { %v3208_v62 = vpop.f32.mrb[50].mxu1  ;;  %2213 = vmax.xlane.f32.xlu0 %v4142_v29  ;;  %v4158_v10 = vadd.f32 %v4083_v51, %v2087_v61 }
 0x443   : > { %v2090_v42 = vpop.f32.mrb[51].mxu1  ;;  %2215 = vmax.xlane.f32.xlu1 %v4145_v26  ;;  %v4153_v13 = vadd.f32 %v3208_v62, %v4083_v51 }
 0x444   : > { %4518 = vst [vmem:[#allocation5_spill] sm:$0xff] %v4158_v10  ;;  %v4161_v16 = vadd.f32 %v4083_v51, %v2090_v42 }
 0x446   : > { %2225 = vmax.xlane.f32.xlu0 %v4150_v44  ;;  %4519 = vst [vmem:[#allocation6_spill] sm:$0xff] %v4161_v16 }
 0x447   : > { %2227 = vmax.xlane.f32.xlu1 %v4153_v13 }
 0x448   : > { %v3211_v56 = vpop.f32.mrb[52].mxu1 }
 0x449   : > { %v2103_v37 = vpop.f32.mrb[53].mxu1  ;;  %v4166_v5 = vadd.f32 %v3211_v56, %v4083_v51 }
 0x44a   : > { %v3212_v14 = vpop.f32.mrb[54].mxu1  ;;  %2221 = vmax.xlane.f32.xlu0 %v4158_v10  ;;  %v4174_v31 = vadd.f32 %v4083_v51, %v2103_v37 }
 0x44b   : > { %v2106_v21 = vpop.f32.mrb[55].mxu1  ;;  %2223 = vmax.xlane.f32.xlu1 %v4161_v16  ;;  %4520 = vst [vmem:[#allocation7_spill] sm:$0xff] %v4166_v5  ;;  %v4169_v30 = vadd.f32 %v3212_v14, %v4083_v51 }
 0x44c   : > { %4522 = vst [vmem:[#allocation9_spill] sm:$0xff] %v4174_v31  ;;  %v4177_v0 = vadd.f32 %v4083_v51, %v2106_v21 }
 0x44d   : > { %4521 = vst [vmem:[#allocation8_spill] sm:$0xff] %v4169_v30 }
 0x44e   : > { %2233 = vmax.xlane.f32.xlu0 %v4166_v5  ;;  %4523 = vst [vmem:[#allocation10_spill] sm:$0xff] %v4177_v0 }
 0x44f   : > { %2235 = vmax.xlane.f32.xlu1 %v4169_v30 }
 0x450   : > { %v3215_v27 = vpop.f32.mrb[56].mxu1 }
 0x451   : > { %v2119_v1 = vpop.f32.mrb[57].mxu1  ;;  %v4182_v54 = vadd.f32 %v3215_v27, %v4083_v51 }
 0x452   : > { %v3216_v32 = vpop.f32.mrb[58].mxu1  ;;  %2229 = vmax.xlane.f32.xlu0 %v4174_v31  ;;  %v4190_v58 = vadd.f32 %v4083_v51, %v2119_v1 }
 0x453   : > { %v2122_v52 = vpop.f32.mrb[59].mxu1  ;;  %2231 = vmax.xlane.f32.xlu1 %v4177_v0  ;;  %4524 = vst [vmem:[#allocation11_spill] sm:$0xff] %v4182_v54  ;;  %v4185_v55 = vadd.f32 %v3216_v32, %v4083_v51 }
 0x454   : > { %4526 = vst [vmem:[#allocation13_spill] sm:$0xff] %v4190_v58  ;;  %v4193_v63 = vadd.f32 %v4083_v51, %v2122_v52 }
 0x455   : > { %4525 = vst [vmem:[#allocation12_spill] sm:$0xff] %v4185_v55 }
 0x456   : > { %2241 = vmax.xlane.f32.xlu0 %v4182_v54  ;;  %4527 = vst [vmem:[#allocation14_spill] sm:$0xff] %v4193_v63 }
 0x457   : > { %2243 = vmax.xlane.f32.xlu1 %v4185_v55 }
 0x458   : > { %v3219_v60 = vpop.f32.mrb[60].mxu1 }
 0x459   : > { %v2135_v4 = vpop.f32.mrb[61].mxu1  ;;  %v4206_v38 = vadd.f32 %v3219_v60, %v4083_v51 }
 0x45a   : > { %v3220_v25 = vpop.f32.mrb[62].mxu1  ;;  %2237 = vmax.xlane.f32.xlu0 %v4190_v58  ;;  %v4198_v35 = vadd.f32 %v4083_v51, %v2135_v4 }
 0x45b   : > { %v2138_v33 = vpop.f32.mrb[63].mxu1  ;;  %2239 = vmax.xlane.f32.xlu1 %v4193_v63  ;;  %4530 = vst [vmem:[#allocation17_spill] sm:$0xff] %v4206_v38  ;;  %v4209_v15 = vadd.f32 %v3220_v25, %v4083_v51 }
 0x45c   : > { %4528 = vst [vmem:[#allocation15_spill] sm:$0xff] %v4198_v35  ;;  %v4201_v36 = vadd.f32 %v4083_v51, %v2138_v33 }
 0x45e   : > { %4529 = vst [vmem:[#allocation16_spill] sm:$0xff] %v4201_v36  ;;  %2245 = vmax.xlane.f32.xlu0 %v4198_v35 }
 0x45f   : > { %2247 = vmax.xlane.f32.xlu1 %v4201_v36 }
 0x462   : > { %2249 = vmax.xlane.f32.xlu0 %v4206_v38 }
 0x463   : > { %2251 = vmax.xlane.f32.xlu1 %v4209_v15 }
 0x4b2   : > { %v4213_v45 = vpop.xlane.xlu1 %2193 }
 0x4b3   : > { %v2255_v43 = vsub.f32 %v4086_v53, %v4213_v45  ;;  %v4217_v46 = vpop.xlane.xlu0 %2189 }
 0x4b4   : > { %v2253_v47 = vsub.f32 %v4089_v57, %v4217_v46 }
 0x4b5   : > { %v2289_v2 = vmul.f32 1.442695, %v2255_v43 }
 0x4b6   : > { %v2285_v3 = vmul.f32 1.442695, %v2253_v47  ;;  %v4221_v6 = vpop.xlane.xlu1 %2195 }
 0x4b7   : > { %3368 = vpow2.f32 %v2289_v2  ;;  %v2256_v51 = vsub.f32 %v4094_v59, %v4221_v6  ;;  %v4225_v18 = vpop.xlane.xlu0 %2191 }
 0x4b8   : > { %v2254_v17 = vsub.f32 %v4097_v9, %v4225_v18  ;;  %3370 = vpow2.f32 %v2285_v3 }
 0x4b9   : > { %v2291_v19 = vmul.f32 1.442695, %v2256_v51 }
 0x4ba   : > { %v2287_v20 = vmul.f32 1.442695, %v2254_v17 }
 0x4bb   : > { %3372 = vpow2.f32 %v2291_v19  ;;  %v4229_v12 = vpop.xlane.xlu0 %2201 }
 0x4bc   : > { %v2259_v49 = vsub.f32 %v4102_v34, %v4229_v12  ;;  %v4233_v50 = vpop.xlane.xlu1 %2203  ;;  %3374 = vpow2.f32 %v2287_v20 }
 0x4bd   : > { %v2260_v24 = vsub.f32 %v4105_v39, %v4233_v50 }
 0x4be   : > { %v2297_v23 = vmul.f32 1.442695, %v2259_v49 }
 0x4bf   : > { %v2299_v61 = vmul.f32 1.442695, %v2260_v24  ;;  %v4237_v62 = vpop.xlane.xlu0 %2197 }
 0x4c0   : > { %3376 = vpow2.f32 %v2297_v23  ;;  %v2257_v42 = vsub.f32 %v4110_v40, %v4237_v62  ;;  %v4241_v56 = vpop.xlane.xlu1 %2199 }
 0x4c1   : > { %v3369_v37 = vpop.eup %3368  ;;  %v2258_v14 = vsub.f32 %v4113_v41, %v4241_v56  ;;  %3378 = vpow2.f32 %v2299_v61 }
 0x4c2   : > { %v2293_v21 = vmul.f32 1.442695, %v2257_v42  ;;  %2353 = vadd.xlane.f32.xlu0 %v3369_v37  ;;  %v3371_v32 = vpop.eup %3370 }
 0x4c3   : > { %v2295_v27 = vmul.f32 1.442695, %v2258_v14  ;;  %v4245_v1 = vpop.xlane.xlu0 %2209 }
 0x4c4   : > { %3380 = vpow2.f32 %v2293_v21  ;;  %v2263_v52 = vsub.f32 %v4117_v48, %v4245_v1  ;;  %v4249_v60 = vpop.xlane.xlu1 %2211 }
 0x4c5   : > { %v3373_v4 = vpop.eup %3372  ;;  %v2264_v25 = vsub.f32 %v4121_v7, %v4249_v60  ;;  %3382 = vpow2.f32 %v2295_v27 }
 0x4c6   : > { %v2305_v33 = vmul.f32 1.442695, %v2263_v52  ;;  %2355 = vadd.xlane.f32.xlu1 %v3373_v4  ;;  %2349 = vadd.xlane.f32.xlu0 %v3371_v32  ;;  %v3375_v51 = vpop.eup %3374 }
 0x4c7   : > { %v2307_v43 = vmul.f32 1.442695, %v2264_v25  ;;  %v4253_v47 = vpop.xlane.xlu0 %2205 }
 0x4c8   : > { %3384 = vpow2.f32 %v2305_v33  ;;  %v2261_v2 = vsub.f32 %v4126_v8, %v4253_v47  ;;  %v4257_v3 = vpop.xlane.xlu1 %2207 }
 0x4c9   : > { %v2262_v17 = vsub.f32 %v4129_v11, %v4257_v3  ;;  %3386 = vpow2.f32 %v2307_v43 }
 0x4ca   : > { %v3377_v19 = vpop.eup %3376  ;;  %v2301_v20 = vmul.f32 1.442695, %v2261_v2  ;;  %2351 = vadd.xlane.f32.xlu1 %v3375_v51 }
 0x4cb   : > { %v2303_v49 = vmul.f32 1.442695, %v2262_v17  ;;  %2361 = vadd.xlane.f32.xlu0 %v3377_v19  ;;  %v4261_v24 = vpop.xlane.xlu0 %2217  ;;  %v3379_v42 = vpop.eup %3378 }
 0x4cc   : > { %3388 = vpow2.f32 %v2301_v20  ;;  %v2267_v23 = vsub.f32 %v4133_v22, %v4261_v24  ;;  %v4265_v61 = vpop.xlane.xlu1 %2219 }
 0x4cd   : > { %v2268_v37 = vsub.f32 %v4137_v28, %v4265_v61  ;;  %3390 = vpow2.f32 %v2303_v49 }
 0x4ce   : > { %v3381_v14 = vpop.eup %3380  ;;  %v2313_v21 = vmul.f32 1.442695, %v2267_v23  ;;  %2363 = vadd.xlane.f32.xlu1 %v3379_v42 }
 0x4cf   : > { %v2315_v27 = vmul.f32 1.442695, %v2268_v37  ;;  %2357 = vadd.xlane.f32.xlu0 %v3381_v14  ;;  %v4269_v32 = vpop.xlane.xlu0 %2213  ;;  %v3383_v25 = vpop.eup %3382 }
 0x4d0   : > { %3392 = vpow2.f32 %v2313_v21  ;;  %v2265_v52 = vsub.f32 %v4142_v29, %v4269_v32  ;;  %v4273_v4 = vpop.xlane.xlu1 %2215 }
 0x4d1   : > { %v2266_v33 = vsub.f32 %v4145_v26, %v4273_v4  ;;  %3394 = vpow2.f32 %v2315_v27 }
 0x4d2   : > { %v3385_v43 = vpop.eup %3384  ;;  %v2309_v2 = vmul.f32 1.442695, %v2265_v52  ;;  %2359 = vadd.xlane.f32.xlu1 %v3383_v25 }
 0x4d3   : > { %v2311_v51 = vmul.f32 1.442695, %v2266_v33  ;;  %2369 = vadd.xlane.f32.xlu0 %v3385_v43  ;;  %v4277_v17 = vpop.xlane.xlu0 %2225  ;;  %v3387_v49 = vpop.eup %3386 }
 0x4d4   : > { %3396 = vpow2.f32 %v2309_v2  ;;  %v2271_v19 = vsub.f32 %v4150_v44, %v4277_v17  ;;  %v4281_v20 = vpop.xlane.xlu1 %2227 }
 0x4d5   : > { %v2272_v23 = vsub.f32 %v4153_v13, %v4281_v20  ;;  %3398 = vpow2.f32 %v2311_v51 }
 0x4d6   : > { %v3389_v42 = vpop.eup %3388  ;;  %v2321_v37 = vmul.f32 1.442695, %v2271_v19  ;;  %2371 = vadd.xlane.f32.xlu1 %v3387_v49 }
 0x4d7   : > { %v2323_v14 = vmul.f32 1.442695, %v2272_v23  ;;  %2365 = vadd.xlane.f32.xlu0 %v3389_v42  ;;  %v4285_v21 = vpop.xlane.xlu0 %2221  ;;  %v3391_v25 = vpop.eup %3390 }
 0x4d8   : > { %3400 = vpow2.f32 %v2321_v37  ;;  %v2269_v27 = vsub.f32 %v4158_v10, %v4285_v21  ;;  %v4289_v52 = vpop.xlane.xlu1 %2223 }
 0x4d9   : > { %v2270_v33 = vsub.f32 %v4161_v16, %v4289_v52  ;;  %3402 = vpow2.f32 %v2323_v14 }
 0x4da   : > { %v3393_v43 = vpop.eup %3392  ;;  %v2317_v2 = vmul.f32 1.442695, %v2269_v27  ;;  %2367 = vadd.xlane.f32.xlu1 %v3391_v25 }
 0x4db   : > { %v2319_v19 = vmul.f32 1.442695, %v2270_v33  ;;  %2377 = vadd.xlane.f32.xlu0 %v3393_v43  ;;  %v4293_v51 = vpop.xlane.xlu0 %2233  ;;  %v3395_v42 = vpop.eup %3394 }
 0x4dc   : > { %3404 = vpow2.f32 %v2317_v2  ;;  %v2275_v49 = vsub.f32 %v4166_v5, %v4293_v51  ;;  %v4297_v23 = vpop.xlane.xlu1 %2235 }
 0x4dd   : > { %v2276_v37 = vsub.f32 %v4169_v30, %v4297_v23  ;;  %3406 = vpow2.f32 %v2319_v19 }
 0x4de   : > { %v3397_v10 = vpop.eup %3396  ;;  %v2329_v16 = vmul.f32 1.442695, %v2275_v49  ;;  %2379 = vadd.xlane.f32.xlu1 %v3395_v42 }
 0x4df   : > { %v2331_v27 = vmul.f32 1.442695, %v2276_v37  ;;  %2373 = vadd.xlane.f32.xlu0 %v3397_v10  ;;  %v4301_v14 = vpop.xlane.xlu0 %2229  ;;  %v3399_v43 = vpop.eup %3398 }
 0x4e0   : > { %3408 = vpow2.f32 %v2329_v16  ;;  %v2273_v25 = vsub.f32 %v4174_v31, %v4301_v14  ;;  %v4305_v33 = vpop.xlane.xlu1 %2231 }
 0x4e1   : > { %v2274_v2 = vsub.f32 %v4177_v0, %v4305_v33  ;;  %3410 = vpow2.f32 %v2331_v27 }
 0x4e2   : > { %v3401_v5 = vpop.eup %3400  ;;  %v2325_v30 = vmul.f32 1.442695, %v2273_v25  ;;  %2375 = vadd.xlane.f32.xlu1 %v3399_v43 }
 0x4e3   : > { %v2327_v49 = vmul.f32 1.442695, %v2274_v2  ;;  %2385 = vadd.xlane.f32.xlu0 %v3401_v5  ;;  %v4309_v19 = vpop.xlane.xlu0 %2241  ;;  %v3403_v42 = vpop.eup %3402 }
 0x4e4   : > { %3412 = vpow2.f32 %v2325_v30  ;;  %v2279_v10 = vsub.f32 %v4182_v54, %v4309_v19  ;;  %v4313_v16 = vpop.xlane.xlu1 %2243 }
 0x4e5   : > { %v2280_v37 = vsub.f32 %v4185_v55, %v4313_v16  ;;  %3414 = vpow2.f32 %v2327_v49 }
 0x4e6   : > { %v3405_v31 = vpop.eup %3404  ;;  %v2337_v0 = vmul.f32 1.442695, %v2279_v10  ;;  %2387 = vadd.xlane.f32.xlu1 %v3403_v42 }
 0x4e7   : > { %v2339_v25 = vmul.f32 1.442695, %v2280_v37  ;;  %2381 = vadd.xlane.f32.xlu0 %v3405_v31  ;;  %v4317_v27 = vpop.xlane.xlu0 %2237  ;;  %v3407_v43 = vpop.eup %3406 }
 0x4e8   : > { %3416 = vpow2.f32 %v2337_v0  ;;  %v2277_v5 = vsub.f32 %v4190_v58, %v4317_v27  ;;  %v4321_v30 = vpop.xlane.xlu1 %2239 }
 0x4e9   : > { %v2278_v2 = vsub.f32 %v4193_v63, %v4321_v30  ;;  %3418 = vpow2.f32 %v2339_v25 }
 0x4ea   : > { %v3409_v54 = vpop.eup %3408  ;;  %v2333_v55 = vmul.f32 1.442695, %v2277_v5  ;;  %2383 = vadd.xlane.f32.xlu1 %v3407_v43 }
 0x4eb   : > { %v2335_v10 = vmul.f32 1.442695, %v2278_v2  ;;  %2393 = vadd.xlane.f32.xlu0 %v3409_v54  ;;  %v4325_v49 = vpop.xlane.xlu0 %2245  ;;  %v3411_v42 = vpop.eup %3410 }
 0x4ec   : > { %3420 = vpow2.f32 %v2333_v55  ;;  %v2281_v31 = vsub.f32 %v4198_v35, %v4325_v49  ;;  %v4329_v0 = vpop.xlane.xlu1 %2247 }
 0x4ed   : > { %v2282_v37 = vsub.f32 %v4201_v36, %v4329_v0  ;;  %3422 = vpow2.f32 %v2335_v10 }
 0x4ee   : > { %v3413_v58 = vpop.eup %3412  ;;  %v2341_v63 = vmul.f32 1.442695, %v2281_v31  ;;  %2395 = vadd.xlane.f32.xlu1 %v3411_v42 }
 0x4ef   : > { %v2343_v5 = vmul.f32 1.442695, %v2282_v37  ;;  %2389 = vadd.xlane.f32.xlu0 %v3413_v58  ;;  %v4333_v25 = vpop.xlane.xlu0 %2249  ;;  %v3415_v43 = vpop.eup %3414 }
 0x4f0   : > { %3424 = vpow2.f32 %v2341_v63  ;;  %v2283_v54 = vsub.f32 %v4206_v38, %v4333_v25  ;;  %v4337_v55 = vpop.xlane.xlu1 %2251 }
 0x4f1   : > { %v2284_v2 = vsub.f32 %v4209_v15, %v4337_v55  ;;  %3426 = vpow2.f32 %v2343_v5 }
 0x4f2   : > { %v3417_v35 = vpop.eup %3416  ;;  %v2345_v36 = vmul.f32 1.442695, %v2283_v54  ;;  %2391 = vadd.xlane.f32.xlu1 %v3415_v43 }
 0x4f3   : > { %v2347_v31 = vmul.f32 1.442695, %v2284_v2  ;;  %2401 = vadd.xlane.f32.xlu0 %v3417_v35  ;;  %v3419_v58 = vpop.eup %3418 }
 0x4f4   : > { %3428 = vpow2.f32 %v2345_v36 }
 0x4f5   : > { %3430 = vpow2.f32 %v2347_v31 }
 0x4f6   : > { %v3421_v10 = vpop.eup %3420  ;;  %2403 = vadd.xlane.f32.xlu1 %v3419_v58 }
 0x4f7   : > { %2397 = vadd.xlane.f32.xlu0 %v3421_v10  ;;  %v3423_v63 = vpop.eup %3422 }
 0x4fa   : > { %v3425_v42 = vpop.eup %3424  ;;  %2399 = vadd.xlane.f32.xlu1 %v3423_v63 }
 0x4fb   : > { %2405 = vadd.xlane.f32.xlu0 %v3425_v42  ;;  %v3427_v37 = vpop.eup %3426 }
 0x4fe   : > { %v3429_v38 = vpop.eup %3428  ;;  %2407 = vadd.xlane.f32.xlu1 %v3427_v37 }
 0x4ff   : > { %2409 = vadd.xlane.f32.xlu0 %v3429_v38  ;;  %v3431_v54 = vpop.eup %3430 }
 0x502   : > { %2411 = vadd.xlane.f32.xlu1 %v3431_v54 }
 0x54f   : > { %v2354_v5 = vpop.xlane.xlu0 %2353 }
 0x550   : > { %3432 = vlog2.f32 %v2354_v5 }
 0x553   : > { %v2356_v35 = vpop.xlane.xlu1 %2355  ;;  %v2350_v36 = vpop.xlane.xlu0 %2349 }
 0x554   : > { %3434 = vlog2.f32 %v2356_v35 }
 0x555   : > { %3436 = vlog2.f32 %v2350_v36 }
 0x557   : > { %v2352_v43 = vpop.xlane.xlu1 %2351 }
 0x558   : > { %3438 = vlog2.f32 %v2352_v43  ;;  %v2362_v2 = vpop.xlane.xlu0 %2361 }
 0x559   : > { %3440 = vlog2.f32 %v2362_v2 }
 0x55a   : > { %v3433_v31 = vpop.eup %3432 }
 0x55b   : > { %v2418_v58 = vmul.f32 0.6931472, %v3433_v31  ;;  %v2364_v10 = vpop.xlane.xlu1 %2363 }
 0x55c   : > { %3442 = vlog2.f32 %v2364_v10  ;;  %v2358_v38 = vpop.xlane.xlu0 %2357 }
 0x55d   : > { %v2479_v63 = vadd.f32 %v2418_v58, %v4213_v45  ;;  %3444 = vlog2.f32 %v2358_v38 }
 0x55e   : > { %v3435_v42 = vpop.eup %3434 }
 0x55f   : > { %v3437_v37 = vpop.eup %3436  ;;  %v2511_v54 = vsub.f32 %v4086_v53, %v2479_v63  ;;  %v2420_v5 = vmul.f32 0.6931472, %v3435_v42  ;;  %v2360_v35 = vpop.xlane.xlu1 %2359 }
 0x560   : > { %v2414_v36 = vmul.f32 0.6931472, %v3437_v37  ;;  %3446 = vlog2.f32 %v2360_v35  ;;  %v2370_v43 = vpop.xlane.xlu0 %2369 }
 0x561   : > { %2543 = vst [vmem:[%s4346_s17 + $0x10] sm:$0xff] %v2511_v54  ;;  %v2480_v2 = vadd.f32 %v2420_v5, %v4221_v6  ;;  %3448 = vlog2.f32 %v2370_v43 }
 0x562   : > { %v3439_v45 = vpop.eup %3438  ;;  %v2477_v31 = vadd.f32 %v2414_v36, %v4217_v46 }
 0x563   : > { %v3441_v58 = vpop.eup %3440  ;;  %v2512_v53 = vsub.f32 %v4094_v59, %v2480_v2  ;;  %v2416_v10 = vmul.f32 0.6931472, %v3439_v45  ;;  %v2372_v38 = vpop.xlane.xlu1 %2371 }
 0x564   : > { %v2509_v63 = vsub.f32 %v4089_v57, %v2477_v31  ;;  %v2426_v42 = vmul.f32 0.6931472, %v3441_v58  ;;  %3450 = vlog2.f32 %v2372_v38  ;;  %v2366_v37 = vpop.xlane.xlu0 %2365 }
 0x565   : > { %2544 = vst [vmem:[%s4346_s17 + $0x18] sm:$0xff] %v2512_v53  ;;  %v2478_v54 = vadd.f32 %v2416_v10, %v4225_v18  ;;  %3452 = vlog2.f32 %v2366_v37 }
 0x566   : > { %v3443_v6 = vpop.eup %3442  ;;  %2541 = vst [vmem:[%s4346_s17] sm:$0xff] %v2509_v63  ;;  %v2483_v46 = vadd.f32 %v2426_v42, %v4229_v12 }
 0x567   : > { %v3445_v5 = vpop.eup %3444  ;;  %v2510_v59 = vsub.f32 %v4097_v9, %v2478_v54  ;;  %v2428_v35 = vmul.f32 0.6931472, %v3443_v6  ;;  %v2368_v36 = vpop.xlane.xlu1 %2367 }
 0x568   : > { %v2515_v57 = vsub.f32 %v4102_v34, %v2483_v46  ;;  %v2422_v43 = vmul.f32 0.6931472, %v3445_v5  ;;  %3454 = vlog2.f32 %v2368_v36  ;;  %v2378_v2 = vpop.xlane.xlu0 %2377 }
 0x569   : > { %2542 = vst [vmem:[%s4346_s17 + $0x8] sm:$0xff] %v2510_v59  ;;  %v2484_v18 = vadd.f32 %v2428_v35, %v4233_v50  ;;  %3456 = vlog2.f32 %v2378_v2 }
 0x56a   : > { %v3447_v45 = vpop.eup %3446  ;;  %2547 = vst [vmem:[%s4346_s17 + $0x30] sm:$0xff] %v2515_v57  ;;  %v2481_v12 = vadd.f32 %v2422_v43, %v4237_v62 }
 0x56b   : > { %v3449_v31 = vpop.eup %3448  ;;  %v2516_v9 = vsub.f32 %v4105_v39, %v2484_v18  ;;  %v2424_v58 = vmul.f32 0.6931472, %v3447_v45  ;;  %v2380_v53 = vpop.xlane.xlu1 %2379 }
 0x56c   : > { %v2513_v34 = vsub.f32 %v4110_v40, %v2481_v12  ;;  %v2434_v10 = vmul.f32 0.6931472, %v3449_v31  ;;  %3458 = vlog2.f32 %v2380_v53  ;;  %v2374_v38 = vpop.xlane.xlu0 %2373 }
 0x56d   : > { %2548 = vst [vmem:[%s4346_s17 + $0x38] sm:$0xff] %v2516_v9  ;;  %v2482_v50 = vadd.f32 %v2424_v58, %v4241_v56  ;;  %3460 = vlog2.f32 %v2374_v38 }
 0x56e   : > { %v3451_v63 = vpop.eup %3450  ;;  %2545 = vst [vmem:[%s4346_s17 + $0x20] sm:$0xff] %v2513_v34  ;;  %v2487_v62 = vadd.f32 %v2434_v10, %v4245_v1 }
 0x56f   : > { %v3453_v42 = vpop.eup %3452  ;;  %v2514_v39 = vsub.f32 %v4113_v41, %v2482_v50  ;;  %v2436_v37 = vmul.f32 0.6931472, %v3451_v63  ;;  %v2376_v54 = vpop.xlane.xlu1 %2375 }
 0x570   : > { %v2519_v40 = vsub.f32 %v4117_v48, %v2487_v62  ;;  %v2430_v6 = vmul.f32 0.6931472, %v3453_v42  ;;  %3462 = vlog2.f32 %v2376_v54  ;;  %v2386_v46 = vpop.xlane.xlu0 %2385 }
 0x571   : > { %2546 = vst [vmem:[%s4346_s17 + $0x28] sm:$0xff] %v2514_v39  ;;  %v2488_v56 = vadd.f32 %v2436_v37, %v4249_v60  ;;  %3464 = vlog2.f32 %v2386_v46 }
 0x572   : > { %v3455_v5 = vpop.eup %3454  ;;  %2551 = vst [vmem:[%s4346_s17 + $0x50] sm:$0xff] %v2519_v40  ;;  %v2485_v1 = vadd.f32 %v2430_v6, %v4253_v47 }
 0x573   : > { %v3457_v59 = vpop.eup %3456  ;;  %v2520_v41 = vsub.f32 %v4121_v7, %v2488_v56  ;;  %v2432_v35 = vmul.f32 0.6931472, %v3455_v5  ;;  %v2388_v36 = vpop.xlane.xlu1 %2387  ;;  %v4531_v5 = vld [vmem:[#allocation5_spill] sm:$0xff] }
 0x574   : > { %v2517_v48 = vsub.f32 %v4126_v8, %v2485_v1  ;;  %v2442_v57 = vmul.f32 0.6931472, %v3457_v59  ;;  %3466 = vlog2.f32 %v2388_v36  ;;  %v2382_v43 = vpop.xlane.xlu0 %2381  ;;  %v4532_v36 = vld [vmem:[#allocation6_spill] sm:$0xff] }
 0x575   : > { %2552 = vst [vmem:[%s4346_s17 + $0x58] sm:$0xff] %v2520_v41  ;;  %v2486_v60 = vadd.f32 %v2432_v35, %v4257_v3  ;;  %3468 = vlog2.f32 %v2382_v43  ;;  %v4533_v43 = vld [vmem:[#allocation7_spill] sm:$0xff] }
 0x576   : > { %v3459_v2 = vpop.eup %3458  ;;  %2549 = vst [vmem:[%s4346_s17 + $0x40] sm:$0xff] %v2517_v48  ;;  %v2491_v47 = vadd.f32 %v2442_v57, %v4261_v24 }
 0x577   : > { %v3461_v18 = vpop.eup %3460  ;;  %v2518_v7 = vsub.f32 %v4129_v11, %v2486_v60  ;;  %v2444_v45 = vmul.f32 0.6931472, %v3459_v2  ;;  %v2384_v12 = vpop.xlane.xlu1 %2383 }
 0x578   : > { %v2523_v8 = vsub.f32 %v4133_v22, %v2491_v47  ;;  %v2438_v31 = vmul.f32 0.6931472, %v3461_v18  ;;  %3470 = vlog2.f32 %v2384_v12  ;;  %v2394_v9 = vpop.xlane.xlu0 %2393 }
 0x579   : > { %2550 = vst [vmem:[%s4346_s17 + $0x48] sm:$0xff] %v2518_v7  ;;  %v2492_v3 = vadd.f32 %v2444_v45, %v4265_v61  ;;  %3472 = vlog2.f32 %v2394_v9  ;;  %v4534_v45 = vld [vmem:[#allocation8_spill] sm:$0xff]  ;;  %v4535_v9 = vld [vmem:[#allocation9_spill] sm:$0xff] }
 0x57a   : > { %v3463_v58 = vpop.eup %3462  ;;  %2555 = vst [vmem:[%s4346_s17 + $0x70] sm:$0xff] %v2523_v8  ;;  %v2489_v24 = vadd.f32 %v2438_v31, %v4269_v32 }
 0x57b   : > { %v3465_v53 = vpop.eup %3464  ;;  %v2524_v11 = vsub.f32 %v4137_v28, %v2492_v3  ;;  %v2440_v34 = vmul.f32 0.6931472, %v3463_v58  ;;  %v2396_v10 = vpop.xlane.xlu1 %2395 }
 0x57c   : > { %v2521_v22 = vsub.f32 %v4142_v29, %v2489_v24  ;;  %v2450_v38 = vmul.f32 0.6931472, %v3465_v53  ;;  %3474 = vlog2.f32 %v2396_v10  ;;  %v2390_v50 = vpop.xlane.xlu0 %2389 }
 0x57d   : > { %2556 = vst [vmem:[%s4346_s17 + $0x78] sm:$0xff] %v2524_v11  ;;  %v2490_v61 = vadd.f32 %v2440_v34, %v4273_v4  ;;  %3476 = vlog2.f32 %v2390_v50  ;;  %v4536_v34 = vld [vmem:[#allocation10_spill] sm:$0xff]  ;;  %v4537_v50 = vld [vmem:[#allocation11_spill] sm:$0xff] }
 0x57e   : > { %v3467_v63 = vpop.eup %3466  ;;  %2553 = vst [vmem:[%s4346_s17 + $0x60] sm:$0xff] %v2521_v22  ;;  %v2495_v32 = vadd.f32 %v2450_v38, %v4277_v17 }
 0x57f   : > { %v3469_v62 = vpop.eup %3468  ;;  %v2522_v28 = vsub.f32 %v4145_v26, %v2490_v61  ;;  %v2452_v42 = vmul.f32 0.6931472, %v3467_v63  ;;  %v2392_v39 = vpop.xlane.xlu1 %2391 }
 0x580   : > { %v2527_v29 = vsub.f32 %v4150_v44, %v2495_v32  ;;  %v2446_v37 = vmul.f32 0.6931472, %v3469_v62  ;;  %3478 = vlog2.f32 %v2392_v39  ;;  %v2402_v54 = vpop.xlane.xlu0 %2401 }
 0x581   : > { %2554 = vst [vmem:[%s4346_s17 + $0x68] sm:$0xff] %v2522_v28  ;;  %v2496_v4 = vadd.f32 %v2452_v42, %v4281_v20  ;;  %3480 = vlog2.f32 %v2402_v54  ;;  %v4538_v28 = vld [vmem:[#allocation12_spill] sm:$0xff] }
 0x582   : > { %v3471_v40 = vpop.eup %3470  ;;  %2559 = vst [vmem:[%s4346_s17 + $0x90] sm:$0xff] %v2527_v29  ;;  %v2493_v17 = vadd.f32 %v2446_v37, %v4285_v21  ;;  %v4539_v29 = vld [vmem:[#allocation13_spill] sm:$0xff] }
 0x583   : > { %v3473_v6 = vpop.eup %3472  ;;  %v2528_v26 = vsub.f32 %v4153_v13, %v2496_v4  ;;  %v2448_v46 = vmul.f32 0.6931472, %v3471_v40  ;;  %v2404_v56 = vpop.xlane.xlu1 %2403 }
 0x584   : > { %v2525_v44 = vsub.f32 %v4531_v5, %v2493_v17  ;;  %v2458_v1 = vmul.f32 0.6931472, %v3473_v6  ;;  %3482 = vlog2.f32 %v2404_v56  ;;  %v2398_v59 = vpop.xlane.xlu0 %2397  ;;  %v4540_v17 = vld [vmem:[#allocation14_spill] sm:$0xff] }
 0x585   : > { %2560 = vst [vmem:[%s4346_s17 + $0x98] sm:$0xff] %v2528_v26  ;;  %v2494_v20 = vadd.f32 %v2448_v46, %v4289_v52  ;;  %3484 = vlog2.f32 %v2398_v59  ;;  %v4541_v46 = vld [vmem:[#allocation15_spill] sm:$0xff]  ;;  %v4542_v59 = vld [vmem:[#allocation16_spill] sm:$0xff] }
 0x586   : > { %v3475_v41 = vpop.eup %3474  ;;  %2557 = vst [vmem:[%s4346_s17 + $0x80] sm:$0xff] %v2525_v44  ;;  %v2499_v21 = vadd.f32 %v2458_v1, %v4293_v51 }
 0x587   : > { %v3477_v35 = vpop.eup %3476  ;;  %v2526_v13 = vsub.f32 %v4532_v36, %v2494_v20  ;;  %v2460_v48 = vmul.f32 0.6931472, %v3475_v41  ;;  %v2400_v57 = vpop.xlane.xlu1 %2399  ;;  %v4543_v41 = vld [vmem:[#allocation17_spill] sm:$0xff] }
 0x588   : > { %v2531_v60 = vsub.f32 %v4533_v43, %v2499_v21  ;;  %v2454_v2 = vmul.f32 0.6931472, %v3477_v35  ;;  %3486 = vlog2.f32 %v2400_v57  ;;  %v2406_v47 = vpop.xlane.xlu0 %2405 }
 0x589   : > { %2558 = vst [vmem:[%s4346_s17 + $0x88] sm:$0xff] %v2526_v13  ;;  %v2500_v52 = vadd.f32 %v2460_v48, %v4297_v23  ;;  %3488 = vlog2.f32 %v2406_v47 }
 0x58a   : > { %v3479_v18 = vpop.eup %3478  ;;  %2563 = vst [vmem:[%s4346_s17 + $0xb0] sm:$0xff] %v2531_v60  ;;  %v2497_v51 = vadd.f32 %v2454_v2, %v4301_v14 }
 0x58b   : > { %v3481_v7 = vpop.eup %3480  ;;  %v2532_v12 = vsub.f32 %v4534_v45, %v2500_v52  ;;  %v2456_v8 = vmul.f32 0.6931472, %v3479_v18  ;;  %v2408_v31 = vpop.xlane.xlu1 %2407 }
 0x58c   : > { %v2529_v3 = vsub.f32 %v4535_v9, %v2497_v51  ;;  %v2466_v58 = vmul.f32 0.6931472, %v3481_v7  ;;  %3490 = vlog2.f32 %v2408_v31  ;;  %v2410_v24 = vpop.xlane.xlu0 %2409 }
 0x58d   : > { %2564 = vst [vmem:[%s4346_s17 + $0xb8] sm:$0xff] %v2532_v12  ;;  %v2498_v23 = vadd.f32 %v2456_v8, %v4305_v33  ;;  %3492 = vlog2.f32 %v2410_v24 }
 0x58e   : > { %v3483_v53 = vpop.eup %3482  ;;  %2561 = vst [vmem:[%s4346_s17 + $0xa0] sm:$0xff] %v2529_v3  ;;  %v2503_v14 = vadd.f32 %v2466_v58, %v4309_v19 }
 0x58f   : > { %v3485_v11 = vpop.eup %3484  ;;  %v2530_v10 = vsub.f32 %v4536_v34, %v2498_v23  ;;  %v2468_v22 = vmul.f32 0.6931472, %v3483_v53  ;;  %v2412_v38 = vpop.xlane.xlu1 %2411 }
 0x590   : > { %v2535_v61 = vsub.f32 %v4537_v50, %v2503_v14  ;;  %v2462_v63 = vmul.f32 0.6931472, %v3485_v11  ;;  %3494 = vlog2.f32 %v2412_v38 }
 0x591   : > { %2562 = vst [vmem:[%s4346_s17 + $0xa8] sm:$0xff] %v2530_v10  ;;  %v2504_v32 = vadd.f32 %v2468_v22, %v4313_v16 }
 0x592   : > { %v3487_v33 = vpop.eup %3486  ;;  %2567 = vst [vmem:[%s4346_s17 + $0xd0] sm:$0xff] %v2535_v61  ;;  %v2501_v62 = vadd.f32 %v2462_v63, %v4317_v27 }
 0x593   : > { %v3489_v19 = vpop.eup %3488  ;;  %v2536_v42 = vsub.f32 %v4538_v28, %v2504_v32  ;;  %v2464_v39 = vmul.f32 0.6931472, %v3487_v33 }
 0x594   : > { %v2533_v37 = vsub.f32 %v4539_v29, %v2501_v62  ;;  %v2470_v54 = vmul.f32 0.6931472, %v3489_v19 }
 0x595   : > { %2568 = vst [vmem:[%s4346_s17 + $0xd8] sm:$0xff] %v2536_v42  ;;  %v2502_v4 = vadd.f32 %v2464_v39, %v4321_v30 }
 0x596   : > { %v3491_v40 = vpop.eup %3490  ;;  %2565 = vst [vmem:[%s4346_s17 + $0xc0] sm:$0xff] %v2533_v37  ;;  %v2505_v16 = vadd.f32 %v2470_v54, %v4325_v49 }
 0x597   : > { %v3493_v27 = vpop.eup %3492  ;;  %v2534_v6 = vsub.f32 %v4540_v17, %v2502_v4  ;;  %v2472_v26 = vmul.f32 0.6931472, %v3491_v40 }
 0x598   : > { %v2537_v56 = vsub.f32 %v4541_v46, %v2505_v16  ;;  %v2474_v5 = vmul.f32 0.6931472, %v3493_v27 }
 0x599   : > { %2566 = vst [vmem:[%s4346_s17 + $0xc8] sm:$0xff] %v2534_v6  ;;  %v2506_v44 = vadd.f32 %v2472_v26, %v4329_v0 }
 0x59a   : > { %v3495_v30 = vpop.eup %3494  ;;  %2569 = vst [vmem:[%s4346_s17 + $0xe0] sm:$0xff] %v2537_v56  ;;  %v2507_v1 = vadd.f32 %v2474_v5, %v4333_v25 }
 0x59b   : > { %v2538_v49 = vsub.f32 %v4542_v59, %v2506_v44  ;;  %v2476_v20 = vmul.f32 0.6931472, %v3495_v30 }
 0x59c   : > { %v2539_v21 = vsub.f32 %v4543_v41, %v2507_v1 }
 0x59d   : > { %2570 = vst [vmem:[%s4346_s17 + $0xe8] sm:$0xff] %v2538_v49  ;;  %v2508_v35 = vadd.f32 %v2476_v20, %v4337_v55 }
 0x59e   : > { %2571 = vst [vmem:[%s4346_s17 + $0xf0] sm:$0xff] %v2539_v21 }
 0x59f   : > { %v2540_v0 = vsub.f32 %v4209_v15, %v2508_v35 }
 0x5a1   : > { %2572 = vst [vmem:[%s4346_s17 + $0xf8] sm:$0xff] %v2540_v0 }
 0x5a2   : > { %3509 = shalt.err (!%p3506_p3)
}
 0x5a3   : > { %s3510_s10 = scalar_lea.hbm %s4445_s22, 4096  ;;  %s3514_s17 = scalar_lea.hbm %s4502_s8, 8192 }
 0x5a4   : > { %p3511_p4 = scmp.ne.s32.totalorder %s4445_s22, %s3510_s10  ;;  %p3515_p9 = scmp.lt.u32.totalorder %s4445_s22, %s4502_s8 }
 0x5a5   : > { %p3516_p10 = scmp.lt.u32.totalorder %s3514_s17, %s3510_s10  ;;  %p3518_p12 = scmp.lt.u32.totalorder %s3510_s10, %s4445_s22 }
 0x5a6   : > { %p3512_p7 = pnand %p3511_p4, %p3646_p5 }
 0x5a7   : > { %p3517_p11 = por %p3516_p10, %p3515_p9 }
 0x5a8   : > { %p3513_p8 = pneg %p3512_p7 }
 0x5a9   : > { %p3519_p13 = por %p3518_p12, %p3517_p11 }
 0x5ab   : > { %p3520_p0 = pnand %p3519_p13, %p3513_p8 }
 0x5ad   : > { %3523 = shalt.err (!%p3520_p0)
}
 0x5ae   : > { %s3561_s21 = smov 128   ;;  %s3562_s23 = smov 8  }
 0x5af   : > { %3289 = dma.vmem_to_hbm [thread:$0]  (%p3646_p5), %s4447_s19, 4096, %s4445_s22, %s4453_s9, %s3561_s21, %s3561_s21, %s3562_s23  }
 0x5b0 PF: > { %p3295_p1 = scmp.ge.s32.totalorder %s3558_s30, 2  ;;  %s2603_s24 = sand.u32 1, %s3546_s27  }
 0x5b1   : > { %s2604_s25 = scalar_lea.sflag [#allocation3], %s2603_s24 }
 0x5b2   : > { %p3292_p2 = pnand %p3295_p1, %p3650_p6 }
 0x5b4   : > { %3541 = dma.done.wait (!%p3292_p2), %s2604_s25, 4096  }
 0x5b5   : > { %3543 = vsyncadd (!%p3292_p2), %s2604_s25, 4294963200  ;;  %p18_p3 = scmp.ge.s32.totalorder %s3633_s11, 4   ;;  %s4544_s27 = smov %s3550_s28 }
 0x5b6   : > { %s4545_s28 = smov %s3554_s29  ;;  %s4546_s29 = smov %s3644_s14 }
 0x5b7   : > { %s4547_s30 = smov %s3633_s11  ;;  %20 = sbr.rel (!%p18_p3) target bundleno = 3 (0x3), region = 90 }
 0x5be   :  { %2609 = vsyncpa [#allocation3], 1 }
 0x5bf   :  { %2611 = vsyncpa [#allocation3 + $0x1], 1 }

</bundles_post_ra>
